<compile_context>
chip_gen: v7x
topology: tpu7x:2x2x1
jax: 0.10.0
libtpu: 0.0.40
codegen_flags: <defaults>
</compile_context>

<pallas_src>
import functools

import jax
import jax.numpy as jnp
import numpy as np
from jax.experimental import pallas as pl
from jax.experimental.pallas import tpu as pltpu


# --------------------------- Pallas kernel ---------------------------------

def _silu(x):
    return x * jax.nn.sigmoid(x)


def c2psa_kernel(x_ref,
                 wcv1_ref, scv1_ref, bcv1_ref,
                 wqkv_ref, sqkv_ref, bqkv_ref,
                 wpe_ref, spe_ref, bpe_ref,
                 wproj_ref, sproj_ref, bproj_ref,
                 wf1_ref, sf1_ref, bf1_ref,
                 wf2_ref, sf2_ref, bf2_ref,
                 wcv2_ref, scv2_ref, bcv2_ref,
                 o_ref, pad_ref,
                 *, num_heads, key_dim, head_dim, num_blocks):
    H, W, Cin = x_ref.shape
    seq = H * W
    Cm = wqkv_ref.shape[1]                  # inter_dim
    scale = float(key_dim) ** -0.5
    step = 2 * key_dim + head_dim           # per-head channel stride in qkv

    # ---- cv1: 1x1 conv (single MXU matmul over channels) + folded BN + SiLU
    x2d = x_ref[...].reshape(seq, Cin)
    y = jnp.dot(x2d, wcv1_ref[...], preferred_element_type=jnp.float32)
    y = _silu(y * scv1_ref[...] + bcv1_ref[...])
    x1 = y[:, :Cm]                          # bypass branch
    xb = y[:, Cm:]                          # goes through PSA blocks

    # Zero the depthwise-conv halo scratch once; only the interior is
    # rewritten per block, so the 1-pixel zero border stays valid throughout.
    pad_ref[...] = jnp.zeros(pad_ref.shape, pad_ref.dtype)

    for blk in range(num_blocks):           # static unroll
        # ----------------------- Attention -----------------------
        qkv = jnp.dot(xb, wqkv_ref[blk], preferred_element_type=jnp.float32)
        qkv = qkv * sqkv_ref[blk] + bqkv_ref[blk]        # (seq, nh*(2kd+hd))

        head_outs = []
        head_vs = []
        for h in range(num_heads):
            base = h * step
            qh = qkv[:, base:base + key_dim]                   # (seq, kd)
            kh = qkv[:, base + key_dim:base + 2 * key_dim]     # (seq, kd)
            vh = qkv[:, base + 2 * key_dim:base + step]        # (seq, hd)
            att = jax.lax.dot_general(
                qh, kh, (((1,), (1,)), ((), ())),
                preferred_element_type=jnp.float32) * scale    # (seq, seq)
            att = att - jnp.max(att, axis=-1, keepdims=True)
            att = jnp.exp(att)
            att = att / jnp.sum(att, axis=-1, keepdims=True)
            head_outs.append(jnp.dot(att, vh,
                                     preferred_element_type=jnp.float32))
            head_vs.append(vh)
        out_v = head_outs[0] if num_heads == 1 else jnp.concatenate(head_outs, -1)
        v_all = head_vs[0] if num_heads == 1 else jnp.concatenate(head_vs, -1)

        # positional encoding: depthwise 3x3 conv (zero pad) on v, BN folded
        wpe = wpe_ref[blk]                                     # (9, Cm)
        pad_ref[1:1 + H, 1:1 + W, :] = v_all.reshape(H, W, Cm)
        pe = pad_ref[0:H, 0:W, :] * wpe[0]
        for t in range(1, 9):
            dy, dx = t // 3, t % 3
            pe = pe + pad_ref[dy:dy + H, dx:dx + W, :] * wpe[t]
        pe = pe.reshape(seq, Cm) * spe_ref[blk] + bpe_ref[blk]

        # proj (1x1 conv + BN, no act) on (attention output + pe), residual add
        t1 = out_v + pe
        attn_out = jnp.dot(t1, wproj_ref[blk],
                           preferred_element_type=jnp.float32)
        attn_out = attn_out * sproj_ref[blk] + bproj_ref[blk]
        xb = xb + attn_out

        # -------------------------- FFN ---------------------------
        f = jnp.dot(xb, wf1_ref[blk], preferred_element_type=jnp.float32)
        f = _silu(f * sf1_ref[blk] + bf1_ref[blk])
        f = jnp.dot(f, wf2_ref[blk], preferred_element_type=jnp.float32)
        f = f * sf2_ref[blk] + bf2_ref[blk]
        xb = xb + f

    # ---- cv2 on cat([x1, x2]): single fused MXU matmul with K = 2*inter
    cat = jnp.concatenate([x1, xb], axis=-1)
    z = jnp.dot(cat, wcv2_ref[...], preferred_element_type=jnp.float32)
    z = _silu(z * scv2_ref[...] + bcv2_ref[...])
    o_ref[...] = z.reshape(H, W, Cin).astype(o_ref.dtype)


# --------------------------- wrappers ----------------------------------------

_PARAM_ORDER = ('w_cv1', 's_cv1', 'b_cv1',
                'w_qkv', 's_qkv', 'b_qkv',
                'w_pe', 's_pe', 'b_pe',
                'w_proj', 's_proj', 'b_proj',
                'w_f1', 's_f1', 'b_f1',
                'w_f2', 's_f2', 'b_f2',
                'w_cv2', 's_cv2', 'b_cv2')


def c2psa_forward_nhwc(x_nhwc, params, cfg):
    """Native NHWC entry point (preferred — no layout round-trips)."""
    B, H, W, Cin = x_nhwc.shape
    Cm = cfg['inter_dim']

    param_args = [params[name] for name in _PARAM_ORDER]

    in_specs = [pl.BlockSpec((pl.Squeezed(), H, W, Cin),
                             lambda b: (b, 0, 0, 0))]
    for arr in param_args:
        in_specs.append(
            pl.BlockSpec(tuple(arr.shape), lambda b, _n=arr.ndim: (0,) * _n))

    kernel = functools.partial(
        c2psa_kernel,
        num_heads=cfg['num_heads'], key_dim=cfg['key_dim'],
        head_dim=cfg['head_dim'], num_blocks=cfg['num_blocks'])

    grid_spec = pltpu.PrefetchScalarGridSpec(
        num_scalar_prefetch=0,
        grid=(B,),
        in_specs=in_specs,
        out_specs=pl.BlockSpec((pl.Squeezed(), H, W, Cin),
                               lambda b: (b, 0, 0, 0)),
        scratch_shapes=[pltpu.VMEM((H + 2, W + 2, Cm), jnp.float32)],
    )

    return pl.pallas_call(
        kernel,
        out_shape=jax.ShapeDtypeStruct((B, H, W, Cin), jnp.float32),
        grid_spec=grid_spec,
        compiler_params=pltpu.CompilerParams(
            dimension_semantics=("parallel",),
            vmem_limit_bytes=32 * 1024 * 1024),
    )(x_nhwc.astype(jnp.float32), *param_args)


def c2psa_forward(x_nchw, params, cfg):
    """NCHW shim for parity with the PyTorch module interface."""
    x = jnp.transpose(x_nchw, (0, 2, 3, 1))
    out = c2psa_forward_nhwc(x, params, cfg)
    return jnp.transpose(out, (0, 3, 1, 2))


# --------------------------- params ------------------------------------------

def init_params(key, in_dim, num_blocks=1, expansion=0.5, eps=1e-3):
    inter = int(in_dim * expansion)
    assert inter >= 64 and inter % 64 == 0, \
        "C2PSA requires inter_dim to be a multiple of 64 (num_heads = inter_dim // 64)"
    num_heads = inter // 64
    head_dim = inter // num_heads           # = 64
    key_dim = int(head_dim * 0.5)           # = 32
    hq = inter + 2 * num_heads * key_dim    # qkv output channels

    def bn_fold(k, cout):
        kg, kb, km, kv = jax.random.split(k, 4)
        g = 1.0 + 0.1 * jax.random.normal(kg, (1, cout), jnp.float32)
        be = 0.1 * jax.random.normal(kb, (1, cout), jnp.float32)
        mu = 0.1 * jax.random.normal(km, (1, cout), jnp.float32)
        var = jnp.abs(jax.random.normal(kv, (1, cout), jnp.float32)) + 0.5
        s = g * jax.lax.rsqrt(var + eps)
        b = be - mu * s
        return s, b

    def conv_bn(k, cin, cout):
        kw, kbn = jax.random.split(k, 2)
        w = jax.random.normal(kw, (cin, cout), jnp.float32) / np.sqrt(cin)
        s, b = bn_fold(kbn, cout)
        return w, s, b

    def dw_bn(k, cout):                     # depthwise 3x3 stored as (9, cout)
        kw, kbn = jax.random.split(k, 2)
        w = jax.random.normal(kw, (9, cout), jnp.float32) / 3.0
        s, b = bn_fold(kbn, cout)
        return w, s, b

    keys = jax.random.split(key, 2 + num_blocks)
    w_cv1, s_cv1, b_cv1 = conv_bn(keys[0], in_dim, 2 * inter)
    w_cv2, s_cv2, b_cv2 = conv_bn(keys[1], 2 * inter, in_dim)

    names = ('w_qkv', 's_qkv', 'b_qkv', 'w_pe', 's_pe', 'b_pe',
             'w_proj', 's_proj', 'b_proj', 'w_f1', 's_f1', 'b_f1',
             'w_f2', 's_f2', 'b_f2')
    blocks = {n: [] for n in names}
    for i in range(num_blocks):
        kk = jax.random.split(keys[2 + i], 5)
        wq, sq, bq = conv_bn(kk[0], inter, hq)
        wpe, spe, bpe = dw_bn(kk[1], inter)
        wp, sp, bp = conv_bn(kk[2], inter, inter)
        wf1, sf1, bf1 = conv_bn(kk[3], inter, 2 * inter)
        wf2, sf2, bf2 = conv_bn(kk[4], 2 * inter, inter)
        vals = (wq, sq, bq, wpe, spe, bpe, wp, sp, bp,
                wf1, sf1, bf1, wf2, sf2, bf2)
        for n, v in zip(names, vals):
            blocks[n].append(v)

    params = {'w_cv1': w_cv1, 's_cv1': s_cv1, 'b_cv1': b_cv1,
              'w_cv2': w_cv2, 's_cv2': s_cv2, 'b_cv2': b_cv2}
    for n in names:
        params[n] = jnp.stack(blocks[n], axis=0)

    cfg = dict(num_heads=num_heads, key_dim=key_dim, head_dim=head_dim,
               num_blocks=num_blocks, inter_dim=inter)
    return params, cfg


# --------------------------- pure-JAX reference -------------------------------

def _cbs_ref(x, w, s, b, act):
    y = jnp.einsum('bhwc,cd->bhwd', x, w,
                   precision=jax.lax.Precision.HIGHEST)
    y = y * s.reshape(1, 1, 1, -1) + b.reshape(1, 1, 1, -1)
    return y * jax.nn.sigmoid(y) if act else y


def c2psa_reference(x_nchw, params, cfg):
    p = params
    nh, kd, hd = cfg['num_heads'], cfg['key_dim'], cfg['head_dim']
    nb, Cm = cfg['num_blocks'], cfg['inter_dim']
    scale = kd ** -0.5

    x = jnp.transpose(x_nchw, (0, 2, 3, 1)).astype(jnp.float32)  # NCHW -> NHWC
    B, H, W, C = x.shape
    seq = H * W

    y = _cbs_ref(x, p['w_cv1'], p['s_cv1'], p['b_cv1'], True)
    x1, x2 = y[..., :Cm], y[..., Cm:]

    for blk in range(nb):
        qkv = _cbs_ref(x2, p['w_qkv'][blk], p['s_qkv'][blk], p['b_qkv'][blk],
                       False)
        qkv = qkv.reshape(B, seq, nh, 2 * kd + hd)
        q, k, v = qkv[..., :kd], qkv[..., kd:2 * kd], qkv[..., 2 * kd:]
        att = jnp.einsum('bind,bjnd->bnij', q, k,
                         precision=jax.lax.Precision.HIGHEST) * scale
        att = jax.nn.softmax(att, axis=-1)
        o = jnp.einsum('bnij,bjnd->bind', att, v,
                       precision=jax.lax.Precision.HIGHEST)
        o = o.reshape(B, H, W, Cm)
        v_sp = v.reshape(B, H, W, Cm)

        w_pe = p['w_pe'][blk].reshape(3, 3, 1, Cm)
        pe = jax.lax.conv_general_dilated(
            v_sp, w_pe, window_strides=(1, 1), padding=((1, 1), (1, 1)),
            dimension_numbers=('NHWC', 'HWIO', 'NHWC'),
            feature_group_count=Cm, precision=jax.lax.Precision.HIGHEST)
        pe = pe * p['s_pe'][blk].reshape(1, 1, 1, -1) \
            + p['b_pe'][blk].reshape(1, 1, 1, -1)

        a = _cbs_ref(o + pe, p['w_proj'][blk], p['s_proj'][blk],
                     p['b_proj'][blk], False)
        x2 = x2 + a

        f = _cbs_ref(x2, p['w_f1'][blk], p['s_f1'][blk], p['b_f1'][blk], True)
        f = _cbs_ref(f, p['w_f2'][blk], p['s_f2'][blk], p['b_f2'][blk], False)
        x2 = x2 + f

    out = _cbs_ref(jnp.concatenate([x1, x2], axis=-1),
                   p['w_cv2'], p['s_cv2'], p['b_cv2'], True)
    return jnp.transpose(out, (0, 3, 1, 2))                    # NHWC -> NCHW


# --------------------------- main ---------------------------------------------

if __name__ == "__main__":
    key = jax.random.PRNGKey(0)
    k_x, k_p = jax.random.split(key)

    # Smallest legal C2PSA configuration: in_dim = 128 -> inter_dim = 64,
    # num_heads = 64 // 64 = 1, head_dim = 64, key_dim = 32.
    B, C, H, W = 2, 128, 8, 8
    x = jax.random.normal(k_x, (B, C, H, W), jnp.float32)      # NCHW like PyTorch

    params, cfg = init_params(k_p, C, num_blocks=1, expansion=0.5)

    out = jax.block_until_ready(c2psa_forward(x, params, cfg))
    ref = jax.block_until_ready(c2psa_reference(x, params, cfg))

    np.testing.assert_allclose(np.asarray(out), np.asarray(ref),
                               rtol=2e-3, atol=2e-3)
    assert out.shape == (B, C, H, W)
    print("KERNEL_OK")
</pallas_src>

<mosaic_0001>
module attributes {stable_mosaic.version = 11 : i64} {
  func.func @c2psa_kernel(%arg0: i32, %arg1: memref<1x8x8x128xf32, #tpu.memory_space<vmem>>, %arg2: memref<128x128xf32, #tpu.memory_space<vmem>>, %arg3: memref<1x128xf32, #tpu.memory_space<vmem>>, %arg4: memref<1x128xf32, #tpu.memory_space<vmem>>, %arg5: memref<1x64x128xf32, #tpu.memory_space<vmem>>, %arg6: memref<1x1x128xf32, #tpu.memory_space<vmem>>, %arg7: memref<1x1x128xf32, #tpu.memory_space<vmem>>, %arg8: memref<1x9x64xf32, #tpu.memory_space<vmem>>, %arg9: memref<1x1x64xf32, #tpu.memory_space<vmem>>, %arg10: memref<1x1x64xf32, #tpu.memory_space<vmem>>, %arg11: memref<1x64x64xf32, #tpu.memory_space<vmem>>, %arg12: memref<1x1x64xf32, #tpu.memory_space<vmem>>, %arg13: memref<1x1x64xf32, #tpu.memory_space<vmem>>, %arg14: memref<1x64x128xf32, #tpu.memory_space<vmem>>, %arg15: memref<1x1x128xf32, #tpu.memory_space<vmem>>, %arg16: memref<1x1x128xf32, #tpu.memory_space<vmem>>, %arg17: memref<1x128x64xf32, #tpu.memory_space<vmem>>, %arg18: memref<1x1x64xf32, #tpu.memory_space<vmem>>, %arg19: memref<1x1x64xf32, #tpu.memory_space<vmem>>, %arg20: memref<128x128xf32, #tpu.memory_space<vmem>>, %arg21: memref<1x128xf32, #tpu.memory_space<vmem>>, %arg22: memref<1x128xf32, #tpu.memory_space<vmem>>, %arg23: memref<1x8x8x128xf32, #tpu.memory_space<vmem>>, %arg24: memref<10x10x64xf32, #tpu.memory_space<vmem>>) attributes {dimension_semantics = [#tpu.dimension_semantics<parallel>], iteration_bounds = array<i64: 2>, scalar_prefetch = 0 : i64, scratch_operands = 1 : i64, tpu.core_type = #tpu.core_type<tc>, window_params = [{transform_indices = @transform_0, window_bounds = array<i64: 1, 8, 8, 128>}, {pipeline_mode = #tpu.pipeline_mode<synchronous>, transform_indices = @transform_1, window_bounds = array<i64: 128, 128>}, {pipeline_mode = #tpu.pipeline_mode<synchronous>, transform_indices = @transform_2, window_bounds = array<i64: 1, 128>}, {pipeline_mode = #tpu.pipeline_mode<synchronous>, transform_indices = @transform_3, window_bounds = array<i64: 1, 128>}, {pipeline_mode = #tpu.pipeline_mode<synchronous>, transform_indices = @transform_4, window_bounds = array<i64: 1, 64, 128>}, {pipeline_mode = #tpu.pipeline_mode<synchronous>, transform_indices = @transform_5, window_bounds = array<i64: 1, 1, 128>}, {pipeline_mode = #tpu.pipeline_mode<synchronous>, transform_indices = @transform_6, window_bounds = array<i64: 1, 1, 128>}, {pipeline_mode = #tpu.pipeline_mode<synchronous>, transform_indices = @transform_7, window_bounds = array<i64: 1, 9, 64>}, {pipeline_mode = #tpu.pipeline_mode<synchronous>, transform_indices = @transform_8, window_bounds = array<i64: 1, 1, 64>}, {pipeline_mode = #tpu.pipeline_mode<synchronous>, transform_indices = @transform_9, window_bounds = array<i64: 1, 1, 64>}, {pipeline_mode = #tpu.pipeline_mode<synchronous>, transform_indices = @transform_10, window_bounds = array<i64: 1, 64, 64>}, {pipeline_mode = #tpu.pipeline_mode<synchronous>, transform_indices = @transform_11, window_bounds = array<i64: 1, 1, 64>}, {pipeline_mode = #tpu.pipeline_mode<synchronous>, transform_indices = @transform_12, window_bounds = array<i64: 1, 1, 64>}, {pipeline_mode = #tpu.pipeline_mode<synchronous>, transform_indices = @transform_13, window_bounds = array<i64: 1, 64, 128>}, {pipeline_mode = #tpu.pipeline_mode<synchronous>, transform_indices = @transform_14, window_bounds = array<i64: 1, 1, 128>}, {pipeline_mode = #tpu.pipeline_mode<synchronous>, transform_indices = @transform_15, window_bounds = array<i64: 1, 1, 128>}, {pipeline_mode = #tpu.pipeline_mode<synchronous>, transform_indices = @transform_16, window_bounds = array<i64: 1, 128, 64>}, {pipeline_mode = #tpu.pipeline_mode<synchronous>, transform_indices = @transform_17, window_bounds = array<i64: 1, 1, 64>}, {pipeline_mode = #tpu.pipeline_mode<synchronous>, transform_indices = @transform_18, window_bounds = array<i64: 1, 1, 64>}, {pipeline_mode = #tpu.pipeline_mode<synchronous>, transform_indices = @transform_19, window_bounds = array<i64: 128, 128>}, {pipeline_mode = #tpu.pipeline_mode<synchronous>, transform_indices = @transform_20, window_bounds = array<i64: 1, 128>}, {pipeline_mode = #tpu.pipeline_mode<synchronous>, transform_indices = @transform_21, window_bounds = array<i64: 1, 128>}, {transform_indices = @transform_22, window_bounds = array<i64: 1, 8, 8, 128>}]} {
    %c0 = arith.constant 0 : index
    %c0_0 = arith.constant 0 : index
    %c0_1 = arith.constant 0 : index
    %c0_2 = arith.constant 0 : index
    %0 = vector.load %arg1[%c0, %c0_0, %c0_1, %c0_2] : memref<1x8x8x128xf32, #tpu.memory_space<vmem>>, vector<1x8x8x128xf32>
    %1 = vector.shape_cast %0 : vector<1x8x8x128xf32> to vector<8x8x128xf32>
    %2 = vector.shape_cast %1 : vector<8x8x128xf32> to vector<64x128xf32>
    %c0_3 = arith.constant 0 : index
    %c0_4 = arith.constant 0 : index
    %3 = vector.load %arg2[%c0_3, %c0_4] : memref<128x128xf32, #tpu.memory_space<vmem>>, vector<128x128xf32>
    %cst = arith.constant dense<0.000000e+00> : vector<64x128xf32>
    %4 = tpu.matmul %2, %3, %cst {dimension_numbers = #tpu.dot_dimension_numbers<[1], [0], [0], [1], [0, 0, 1, 1], [], []>} : vector<64x128xf32>, vector<128x128xf32>, vector<64x128xf32> -> vector<64x128xf32>
    %c0_5 = arith.constant 0 : index
    %c0_6 = arith.constant 0 : index
    %5 = vector.load %arg3[%c0_5, %c0_6] : memref<1x128xf32, #tpu.memory_space<vmem>>, vector<1x128xf32>
    %6 = vector.broadcast %5 : vector<1x128xf32> to vector<64x128xf32>
    %7 = arith.mulf %4, %6 : vector<64x128xf32>
    %c0_7 = arith.constant 0 : index
    %c0_8 = arith.constant 0 : index
    %8 = vector.load %arg4[%c0_7, %c0_8] : memref<1x128xf32, #tpu.memory_space<vmem>>, vector<1x128xf32>
    %9 = vector.broadcast %8 : vector<1x128xf32> to vector<64x128xf32>
    %10 = arith.addf %7, %9 : vector<64x128xf32>
    %11 = arith.negf %10 : vector<64x128xf32>
    %12 = math.exp %11 : vector<64x128xf32>
    %cst_9 = arith.constant 1.000000e+00 : f32
    %13 = vector.broadcast %cst_9 : f32 to vector<64x128xf32>
    %14 = arith.addf %13, %12 : vector<64x128xf32>
    %15 = arith.divf %13, %14 : vector<64x128xf32>
    %16 = arith.mulf %10, %15 : vector<64x128xf32>
    %17 = vector.extract_strided_slice %16 {offsets = [0, 0], sizes = [64, 64], strides = [1, 1]} : vector<64x128xf32> to vector<64x64xf32>
    %18 = vector.extract_strided_slice %16 {offsets = [0, 64], sizes = [64, 64], strides = [1, 1]} : vector<64x128xf32> to vector<64x64xf32>
    %cst_10 = arith.constant 0.000000e+00 : f32
    %19 = vector.broadcast %cst_10 : f32 to vector<10x10x64xf32>
    %c0_11 = arith.constant 0 : index
    %c0_12 = arith.constant 0 : index
    %c0_13 = arith.constant 0 : index
    %20 = vector.load %arg24[%c0_11, %c0_12, %c0_13] : memref<10x10x64xf32, #tpu.memory_space<vmem>>, vector<10x10x64xf32>
    tpu.vector_store %arg24[%c0_11, %c0_12, %c0_13], %19 {strides = array<i32>} : memref<10x10x64xf32, #tpu.memory_space<vmem>>, vector<10x10x64xf32>,
    %c0_14 = arith.constant 0 : index
    %c0_15 = arith.constant 0 : index
    %c0_16 = arith.constant 0 : index
    %21 = vector.load %arg5[%c0_14, %c0_15, %c0_16] : memref<1x64x128xf32, #tpu.memory_space<vmem>>, vector<1x64x128xf32>
    %22 = vector.shape_cast %21 : vector<1x64x128xf32> to vector<64x128xf32>
    %cst_17 = arith.constant dense<0.000000e+00> : vector<64x128xf32>
    %23 = tpu.matmul %18, %22, %cst_17 {dimension_numbers = #tpu.dot_dimension_numbers<[1], [0], [0], [1], [0, 0, 1, 1], [], []>} : vector<64x64xf32>, vector<64x128xf32>, vector<64x128xf32> -> vector<64x128xf32>
    %c0_18 = arith.constant 0 : index
    %c0_19 = arith.constant 0 : index
    %c0_20 = arith.constant 0 : index
    %24 = vector.load %arg6[%c0_18, %c0_19, %c0_20] : memref<1x1x128xf32, #tpu.memory_space<vmem>>, vector<1x1x128xf32>
    %25 = vector.shape_cast %24 : vector<1x1x128xf32> to vector<1x128xf32>
    %26 = vector.broadcast %25 : vector<1x128xf32> to vector<64x128xf32>
    %27 = arith.mulf %23, %26 : vector<64x128xf32>
    %c0_21 = arith.constant 0 : index
    %c0_22 = arith.constant 0 : index
    %c0_23 = arith.constant 0 : index
    %28 = vector.load %arg7[%c0_21, %c0_22, %c0_23] : memref<1x1x128xf32, #tpu.memory_space<vmem>>, vector<1x1x128xf32>
    %29 = vector.shape_cast %28 : vector<1x1x128xf32> to vector<1x128xf32>
    %30 = vector.broadcast %29 : vector<1x128xf32> to vector<64x128xf32>
    %31 = arith.addf %27, %30 : vector<64x128xf32>
    %32 = vector.extract_strided_slice %31 {offsets = [0, 0], sizes = [64, 32], strides = [1, 1]} : vector<64x128xf32> to vector<64x32xf32>
    %33 = vector.extract_strided_slice %31 {offsets = [0, 32], sizes = [64, 32], strides = [1, 1]} : vector<64x128xf32> to vector<64x32xf32>
    %34 = vector.extract_strided_slice %31 {offsets = [0, 64], sizes = [64, 64], strides = [1, 1]} : vector<64x128xf32> to vector<64x64xf32>
    %cst_24 = arith.constant dense<0.000000e+00> : vector<64x64xf32>
    %35 = tpu.matmul %32, %33, %cst_24 {dimension_numbers = #tpu.dot_dimension_numbers<[1], [1], [0], [0], [0, 0, 1, 0], [], []>} : vector<64x32xf32>, vector<64x32xf32>, vector<64x64xf32> -> vector<64x64xf32>
    %cst_25 = arith.constant 0.176776692 : f32
    %36 = vector.broadcast %cst_25 : f32 to vector<64x64xf32>
    %37 = arith.mulf %35, %36 : vector<64x64xf32>
    %cst_26 = arith.constant dense<0xFF800000> : vector<64xf32>
    %38 = vector.multi_reduction <maximumf>, %37, %cst_26 [1] : vector<64x64xf32> to vector<64xf32>
    %39 = vector.shape_cast %38 : vector<64xf32> to vector<64x1xf32>
    %40 = vector.broadcast %39 : vector<64x1xf32> to vector<64x64xf32>
    %41 = arith.subf %37, %40 : vector<64x64xf32>
    %42 = math.exp %41 : vector<64x64xf32>
    %cst_27 = arith.constant dense<0.000000e+00> : vector<64xf32>
    %43 = vector.multi_reduction <add>, %42, %cst_27 [1] : vector<64x64xf32> to vector<64xf32>
    %44 = vector.shape_cast %43 : vector<64xf32> to vector<64x1xf32>
    %45 = vector.broadcast %44 : vector<64x1xf32> to vector<64x64xf32>
    %46 = arith.divf %42, %45 : vector<64x64xf32>
    %cst_28 = arith.constant dense<0.000000e+00> : vector<64x64xf32>
    %47 = tpu.matmul %46, %34, %cst_28 {dimension_numbers = #tpu.dot_dimension_numbers<[1], [0], [0], [1], [0, 0, 1, 1], [], []>} : vector<64x64xf32>, vector<64x64xf32>, vector<64x64xf32> -> vector<64x64xf32>
    %c0_29 = arith.constant 0 : index
    %c0_30 = arith.constant 0 : index
    %c0_31 = arith.constant 0 : index
    %48 = vector.load %arg8[%c0_29, %c0_30, %c0_31] : memref<1x9x64xf32, #tpu.memory_space<vmem>>, vector<1x9x64xf32>
    %49 = vector.shape_cast %48 : vector<1x9x64xf32> to vector<9x64xf32>
    %50 = vector.shape_cast %34 : vector<64x64xf32> to vector<8x8x64xf32>
    %c1 = arith.constant 1 : index
    %c1_32 = arith.constant 1 : index
    %c0_33 = arith.constant 0 : index
    %51 = vector.load %arg24[%c1, %c1_32, %c0_33] : memref<10x10x64xf32, #tpu.memory_space<vmem>>, vector<8x8x64xf32>
    tpu.vector_store %arg24[%c1, %c1_32, %c0_33], %50 {strides = array<i32>} : memref<10x10x64xf32, #tpu.memory_space<vmem>>, vector<8x8x64xf32>,
    %c0_34 = arith.constant 0 : index
    %c0_35 = arith.constant 0 : index
    %c0_36 = arith.constant 0 : index
    %52 = vector.load %arg24[%c0_34, %c0_35, %c0_36] : memref<10x10x64xf32, #tpu.memory_space<vmem>>, vector<8x8x64xf32>
    %53 = vector.extract_strided_slice %49 {offsets = [0, 0], sizes = [1, 64], strides = [1, 1]} : vector<9x64xf32> to vector<1x64xf32>
    %54 = vector.shape_cast %53 : vector<1x64xf32> to vector<64xf32>
    %55 = vector.shape_cast %54 : vector<64xf32> to vector<1x1x64xf32>
    %56 = vector.broadcast %55 : vector<1x1x64xf32> to vector<8x8x64xf32>
    %57 = arith.mulf %52, %56 : vector<8x8x64xf32>
    %c0_37 = arith.constant 0 : index
    %c1_38 = arith.constant 1 : index
    %c0_39 = arith.constant 0 : index
    %58 = vector.load %arg24[%c0_37, %c1_38, %c0_39] : memref<10x10x64xf32, #tpu.memory_space<vmem>>, vector<8x8x64xf32>
    %59 = vector.extract_strided_slice %49 {offsets = [1, 0], sizes = [1, 64], strides = [1, 1]} : vector<9x64xf32> to vector<1x64xf32>
    %60 = vector.shape_cast %59 : vector<1x64xf32> to vector<64xf32>
    %61 = vector.shape_cast %60 : vector<64xf32> to vector<1x1x64xf32>
    %62 = vector.broadcast %61 : vector<1x1x64xf32> to vector<8x8x64xf32>
    %63 = arith.mulf %58, %62 : vector<8x8x64xf32>
    %64 = arith.addf %57, %63 : vector<8x8x64xf32>
    %c0_40 = arith.constant 0 : index
    %c2 = arith.constant 2 : index
    %c0_41 = arith.constant 0 : index
    %65 = vector.load %arg24[%c0_40, %c2, %c0_41] : memref<10x10x64xf32, #tpu.memory_space<vmem>>, vector<8x8x64xf32>
    %66 = vector.extract_strided_slice %49 {offsets = [2, 0], sizes = [1, 64], strides = [1, 1]} : vector<9x64xf32> to vector<1x64xf32>
    %67 = vector.shape_cast %66 : vector<1x64xf32> to vector<64xf32>
    %68 = vector.shape_cast %67 : vector<64xf32> to vector<1x1x64xf32>
    %69 = vector.broadcast %68 : vector<1x1x64xf32> to vector<8x8x64xf32>
    %70 = arith.mulf %65, %69 : vector<8x8x64xf32>
    %71 = arith.addf %64, %70 : vector<8x8x64xf32>
    %c1_42 = arith.constant 1 : index
    %c0_43 = arith.constant 0 : index
    %c0_44 = arith.constant 0 : index
    %72 = vector.load %arg24[%c1_42, %c0_43, %c0_44] : memref<10x10x64xf32, #tpu.memory_space<vmem>>, vector<8x8x64xf32>
    %73 = vector.extract_strided_slice %49 {offsets = [3, 0], sizes = [1, 64], strides = [1, 1]} : vector<9x64xf32> to vector<1x64xf32>
    %74 = vector.shape_cast %73 : vector<1x64xf32> to vector<64xf32>
    %75 = vector.shape_cast %74 : vector<64xf32> to vector<1x1x64xf32>
    %76 = vector.broadcast %75 : vector<1x1x64xf32> to vector<8x8x64xf32>
    %77 = arith.mulf %72, %76 : vector<8x8x64xf32>
    %78 = arith.addf %71, %77 : vector<8x8x64xf32>
    %c1_45 = arith.constant 1 : index
    %c1_46 = arith.constant 1 : index
    %c0_47 = arith.constant 0 : index
    %79 = vector.load %arg24[%c1_45, %c1_46, %c0_47] : memref<10x10x64xf32, #tpu.memory_space<vmem>>, vector<8x8x64xf32>
    %80 = vector.extract_strided_slice %49 {offsets = [4, 0], sizes = [1, 64], strides = [1, 1]} : vector<9x64xf32> to vector<1x64xf32>
    %81 = vector.shape_cast %80 : vector<1x64xf32> to vector<64xf32>
    %82 = vector.shape_cast %81 : vector<64xf32> to vector<1x1x64xf32>
    %83 = vector.broadcast %82 : vector<1x1x64xf32> to vector<8x8x64xf32>
    %84 = arith.mulf %79, %83 : vector<8x8x64xf32>
    %85 = arith.addf %78, %84 : vector<8x8x64xf32>
    %c1_48 = arith.constant 1 : index
    %c2_49 = arith.constant 2 : index
    %c0_50 = arith.constant 0 : index
    %86 = vector.load %arg24[%c1_48, %c2_49, %c0_50] : memref<10x10x64xf32, #tpu.memory_space<vmem>>, vector<8x8x64xf32>
    %87 = vector.extract_strided_slice %49 {offsets = [5, 0], sizes = [1, 64], strides = [1, 1]} : vector<9x64xf32> to vector<1x64xf32>
    %88 = vector.shape_cast %87 : vector<1x64xf32> to vector<64xf32>
    %89 = vector.shape_cast %88 : vector<64xf32> to vector<1x1x64xf32>
    %90 = vector.broadcast %89 : vector<1x1x64xf32> to vector<8x8x64xf32>
    %91 = arith.mulf %86, %90 : vector<8x8x64xf32>
    %92 = arith.addf %85, %91 : vector<8x8x64xf32>
    %c2_51 = arith.constant 2 : index
    %c0_52 = arith.constant 0 : index
    %c0_53 = arith.constant 0 : index
    %93 = vector.load %arg24[%c2_51, %c0_52, %c0_53] : memref<10x10x64xf32, #tpu.memory_space<vmem>>, vector<8x8x64xf32>
    %94 = vector.extract_strided_slice %49 {offsets = [6, 0], sizes = [1, 64], strides = [1, 1]} : vector<9x64xf32> to vector<1x64xf32>
    %95 = vector.shape_cast %94 : vector<1x64xf32> to vector<64xf32>
    %96 = vector.shape_cast %95 : vector<64xf32> to vector<1x1x64xf32>
    %97 = vector.broadcast %96 : vector<1x1x64xf32> to vector<8x8x64xf32>
    %98 = arith.mulf %93, %97 : vector<8x8x64xf32>
    %99 = arith.addf %92, %98 : vector<8x8x64xf32>
    %c2_54 = arith.constant 2 : index
    %c1_55 = arith.constant 1 : index
    %c0_56 = arith.constant 0 : index
    %100 = vector.load %arg24[%c2_54, %c1_55, %c0_56] : memref<10x10x64xf32, #tpu.memory_space<vmem>>, vector<8x8x64xf32>
    %101 = vector.extract_strided_slice %49 {offsets = [7, 0], sizes = [1, 64], strides = [1, 1]} : vector<9x64xf32> to vector<1x64xf32>
    %102 = vector.shape_cast %101 : vector<1x64xf32> to vector<64xf32>
    %103 = vector.shape_cast %102 : vector<64xf32> to vector<1x1x64xf32>
    %104 = vector.broadcast %103 : vector<1x1x64xf32> to vector<8x8x64xf32>
    %105 = arith.mulf %100, %104 : vector<8x8x64xf32>
    %106 = arith.addf %99, %105 : vector<8x8x64xf32>
    %c2_57 = arith.constant 2 : index
    %c2_58 = arith.constant 2 : index
    %c0_59 = arith.constant 0 : index
    %107 = vector.load %arg24[%c2_57, %c2_58, %c0_59] : memref<10x10x64xf32, #tpu.memory_space<vmem>>, vector<8x8x64xf32>
    %108 = vector.extract_strided_slice %49 {offsets = [8, 0], sizes = [1, 64], strides = [1, 1]} : vector<9x64xf32> to vector<1x64xf32>
    %109 = vector.shape_cast %108 : vector<1x64xf32> to vector<64xf32>
    %110 = vector.shape_cast %109 : vector<64xf32> to vector<1x1x64xf32>
    %111 = vector.broadcast %110 : vector<1x1x64xf32> to vector<8x8x64xf32>
    %112 = arith.mulf %107, %111 : vector<8x8x64xf32>
    %113 = arith.addf %106, %112 : vector<8x8x64xf32>
    %114 = vector.shape_cast %113 : vector<8x8x64xf32> to vector<64x64xf32>
    %c0_60 = arith.constant 0 : index
    %c0_61 = arith.constant 0 : index
    %c0_62 = arith.constant 0 : index
    %115 = vector.load %arg9[%c0_60, %c0_61, %c0_62] : memref<1x1x64xf32, #tpu.memory_space<vmem>>, vector<1x1x64xf32>
    %116 = vector.shape_cast %115 : vector<1x1x64xf32> to vector<1x64xf32>
    %117 = vector.broadcast %116 : vector<1x64xf32> to vector<64x64xf32>
    %118 = arith.mulf %114, %117 : vector<64x64xf32>
    %c0_63 = arith.constant 0 : index
    %c0_64 = arith.constant 0 : index
    %c0_65 = arith.constant 0 : index
    %119 = vector.load %arg10[%c0_63, %c0_64, %c0_65] : memref<1x1x64xf32, #tpu.memory_space<vmem>>, vector<1x1x64xf32>
    %120 = vector.shape_cast %119 : vector<1x1x64xf32> to vector<1x64xf32>
    %121 = vector.broadcast %120 : vector<1x64xf32> to vector<64x64xf32>
    %122 = arith.addf %118, %121 : vector<64x64xf32>
    %123 = arith.addf %47, %122 : vector<64x64xf32>
    %c0_66 = arith.constant 0 : index
    %c0_67 = arith.constant 0 : index
    %c0_68 = arith.constant 0 : index
    %124 = vector.load %arg11[%c0_66, %c0_67, %c0_68] : memref<1x64x64xf32, #tpu.memory_space<vmem>>, vector<1x64x64xf32>
    %125 = vector.shape_cast %124 : vector<1x64x64xf32> to vector<64x64xf32>
    %cst_69 = arith.constant dense<0.000000e+00> : vector<64x64xf32>
    %126 = tpu.matmul %123, %125, %cst_69 {dimension_numbers = #tpu.dot_dimension_numbers<[1], [0], [0], [1], [0, 0, 1, 1], [], []>} : vector<64x64xf32>, vector<64x64xf32>, vector<64x64xf32> -> vector<64x64xf32>
    %c0_70 = arith.constant 0 : index
    %c0_71 = arith.constant 0 : index
    %c0_72 = arith.constant 0 : index
    %127 = vector.load %arg12[%c0_70, %c0_71, %c0_72] : memref<1x1x64xf32, #tpu.memory_space<vmem>>, vector<1x1x64xf32>
    %128 = vector.shape_cast %127 : vector<1x1x64xf32> to vector<1x64xf32>
    %129 = vector.broadcast %128 : vector<1x64xf32> to vector<64x64xf32>
    %130 = arith.mulf %126, %129 : vector<64x64xf32>
    %c0_73 = arith.constant 0 : index
    %c0_74 = arith.constant 0 : index
    %c0_75 = arith.constant 0 : index
    %131 = vector.load %arg13[%c0_73, %c0_74, %c0_75] : memref<1x1x64xf32, #tpu.memory_space<vmem>>, vector<1x1x64xf32>
    %132 = vector.shape_cast %131 : vector<1x1x64xf32> to vector<1x64xf32>
    %133 = vector.broadcast %132 : vector<1x64xf32> to vector<64x64xf32>
    %134 = arith.addf %130, %133 : vector<64x64xf32>
    %135 = arith.addf %18, %134 : vector<64x64xf32>
    %c0_76 = arith.constant 0 : index
    %c0_77 = arith.constant 0 : index
    %c0_78 = arith.constant 0 : index
    %136 = vector.load %arg14[%c0_76, %c0_77, %c0_78] : memref<1x64x128xf32, #tpu.memory_space<vmem>>, vector<1x64x128xf32>
    %137 = vector.shape_cast %136 : vector<1x64x128xf32> to vector<64x128xf32>
    %cst_79 = arith.constant dense<0.000000e+00> : vector<64x128xf32>
    %138 = tpu.matmul %135, %137, %cst_79 {dimension_numbers = #tpu.dot_dimension_numbers<[1], [0], [0], [1], [0, 0, 1, 1], [], []>} : vector<64x64xf32>, vector<64x128xf32>, vector<64x128xf32> -> vector<64x128xf32>
    %c0_80 = arith.constant 0 : index
    %c0_81 = arith.constant 0 : index
    %c0_82 = arith.constant 0 : index
    %139 = vector.load %arg15[%c0_80, %c0_81, %c0_82] : memref<1x1x128xf32, #tpu.memory_space<vmem>>, vector<1x1x128xf32>
    %140 = vector.shape_cast %139 : vector<1x1x128xf32> to vector<1x128xf32>
    %141 = vector.broadcast %140 : vector<1x128xf32> to vector<64x128xf32>
    %142 = arith.mulf %138, %141 : vector<64x128xf32>
    %c0_83 = arith.constant 0 : index
    %c0_84 = arith.constant 0 : index
    %c0_85 = arith.constant 0 : index
    %143 = vector.load %arg16[%c0_83, %c0_84, %c0_85] : memref<1x1x128xf32, #tpu.memory_space<vmem>>, vector<1x1x128xf32>
    %144 = vector.shape_cast %143 : vector<1x1x128xf32> to vector<1x128xf32>
    %145 = vector.broadcast %144 : vector<1x128xf32> to vector<64x128xf32>
    %146 = arith.addf %142, %145 : vector<64x128xf32>
    %147 = arith.negf %146 : vector<64x128xf32>
    %148 = math.exp %147 : vector<64x128xf32>
    %cst_86 = arith.constant 1.000000e+00 : f32
    %149 = vector.broadcast %cst_86 : f32 to vector<64x128xf32>
    %150 = arith.addf %149, %148 : vector<64x128xf32>
    %151 = arith.divf %149, %150 : vector<64x128xf32>
    %152 = arith.mulf %146, %151 : vector<64x128xf32>
    %c0_87 = arith.constant 0 : index
    %c0_88 = arith.constant 0 : index
    %c0_89 = arith.constant 0 : index
    %153 = vector.load %arg17[%c0_87, %c0_88, %c0_89] : memref<1x128x64xf32, #tpu.memory_space<vmem>>, vector<1x128x64xf32>
    %154 = vector.shape_cast %153 : vector<1x128x64xf32> to vector<128x64xf32>
    %cst_90 = arith.constant dense<0.000000e+00> : vector<64x64xf32>
    %155 = tpu.matmul %152, %154, %cst_90 {dimension_numbers = #tpu.dot_dimension_numbers<[1], [0], [0], [1], [0, 0, 1, 1], [], []>} : vector<64x128xf32>, vector<128x64xf32>, vector<64x64xf32> -> vector<64x64xf32>
    %c0_91 = arith.constant 0 : index
    %c0_92 = arith.constant 0 : index
    %c0_93 = arith.constant 0 : index
    %156 = vector.load %arg18[%c0_91, %c0_92, %c0_93] : memref<1x1x64xf32, #tpu.memory_space<vmem>>, vector<1x1x64xf32>
    %157 = vector.shape_cast %156 : vector<1x1x64xf32> to vector<1x64xf32>
    %158 = vector.broadcast %157 : vector<1x64xf32> to vector<64x64xf32>
    %159 = arith.mulf %155, %158 : vector<64x64xf32>
    %c0_94 = arith.constant 0 : index
    %c0_95 = arith.constant 0 : index
    %c0_96 = arith.constant 0 : index
    %160 = vector.load %arg19[%c0_94, %c0_95, %c0_96] : memref<1x1x64xf32, #tpu.memory_space<vmem>>, vector<1x1x64xf32>
    %161 = vector.shape_cast %160 : vector<1x1x64xf32> to vector<1x64xf32>
    %162 = vector.broadcast %161 : vector<1x64xf32> to vector<64x64xf32>
    %163 = arith.addf %159, %162 : vector<64x64xf32>
    %164 = arith.addf %135, %163 : vector<64x64xf32>
    %165 = tpu.concatenate %17, %164 in 1 : vector<64x64xf32>, vector<64x64xf32> -> vector<64x128xf32>
    %c0_97 = arith.constant 0 : index
    %c0_98 = arith.constant 0 : index
    %166 = vector.load %arg20[%c0_97, %c0_98] : memref<128x128xf32, #tpu.memory_space<vmem>>, vector<128x128xf32>
    %cst_99 = arith.constant dense<0.000000e+00> : vector<64x128xf32>
    %167 = tpu.matmul %165, %166, %cst_99 {dimension_numbers = #tpu.dot_dimension_numbers<[1], [0], [0], [1], [0, 0, 1, 1], [], []>} : vector<64x128xf32>, vector<128x128xf32>, vector<64x128xf32> -> vector<64x128xf32>
    %c0_100 = arith.constant 0 : index
    %c0_101 = arith.constant 0 : index
    %168 = vector.load %arg21[%c0_100, %c0_101] : memref<1x128xf32, #tpu.memory_space<vmem>>, vector<1x128xf32>
    %169 = vector.broadcast %168 : vector<1x128xf32> to vector<64x128xf32>
    %170 = arith.mulf %167, %169 : vector<64x128xf32>
    %c0_102 = arith.constant 0 : index
    %c0_103 = arith.constant 0 : index
    %171 = vector.load %arg22[%c0_102, %c0_103] : memref<1x128xf32, #tpu.memory_space<vmem>>, vector<1x128xf32>
    %172 = vector.broadcast %171 : vector<1x128xf32> to vector<64x128xf32>
    %173 = arith.addf %170, %172 : vector<64x128xf32>
    %174 = arith.negf %173 : vector<64x128xf32>
    %175 = math.exp %174 : vector<64x128xf32>
    %cst_104 = arith.constant 1.000000e+00 : f32
    %176 = vector.broadcast %cst_104 : f32 to vector<64x128xf32>
    %177 = arith.addf %176, %175 : vector<64x128xf32>
    %178 = arith.divf %176, %177 : vector<64x128xf32>
    %179 = arith.mulf %173, %178 : vector<64x128xf32>
    %180 = vector.shape_cast %179 : vector<64x128xf32> to vector<8x8x128xf32>
    %c0_105 = arith.constant 0 : index
    %c0_106 = arith.constant 0 : index
    %c0_107 = arith.constant 0 : index
    %c0_108 = arith.constant 0 : index
    %181 = vector.load %arg23[%c0_105, %c0_106, %c0_107, %c0_108] : memref<1x8x8x128xf32, #tpu.memory_space<vmem>>, vector<1x8x8x128xf32>
    %182 = vector.shape_cast %181 : vector<1x8x8x128xf32> to vector<8x8x128xf32>
    %183 = vector.shape_cast %180 : vector<8x8x128xf32> to vector<1x8x8x128xf32>
    tpu.vector_store %arg23[%c0_105, %c0_106, %c0_107, %c0_108], %183 {strides = array<i32>} : memref<1x8x8x128xf32, #tpu.memory_space<vmem>>, vector<1x8x8x128xf32>,
    return
  }
  func.func @transform_0(%arg0: i32) -> (i32, i32, i32, i32) {
    %c0_i32 = arith.constant 0 : i32
    %c0_i32_0 = arith.constant 0 : i32
    %c0_i32_1 = arith.constant 0 : i32
    %c0_i32_2 = arith.constant 0 : i32
    return %arg0, %c0_i32, %c0_i32_0, %c0_i32_1 : i32, i32, i32, i32
  }
  func.func @transform_1(%arg0: i32) -> (i32, i32) {
    %c0_i32 = arith.constant 0 : i32
    %c0_i32_0 = arith.constant 0 : i32
    %c0_i32_1 = arith.constant 0 : i32
    return %c0_i32, %c0_i32_0 : i32, i32
  }
  func.func @transform_2(%arg0: i32) -> (i32, i32) {
    %c0_i32 = arith.constant 0 : i32
    %c0_i32_0 = arith.constant 0 : i32
    %c0_i32_1 = arith.constant 0 : i32
    return %c0_i32, %c0_i32_0 : i32, i32
  }
  func.func @transform_3(%arg0: i32) -> (i32, i32) {
    %c0_i32 = arith.constant 0 : i32
    %c0_i32_0 = arith.constant 0 : i32
    %c0_i32_1 = arith.constant 0 : i32
    return %c0_i32, %c0_i32_0 : i32, i32
  }
  func.func @transform_4(%arg0: i32) -> (i32, i32, i32) {
    %c0_i32 = arith.constant 0 : i32
    %c0_i32_0 = arith.constant 0 : i32
    %c0_i32_1 = arith.constant 0 : i32
    %c0_i32_2 = arith.constant 0 : i32
    return %c0_i32, %c0_i32_0, %c0_i32_1 : i32, i32, i32
  }
  func.func @transform_5(%arg0: i32) -> (i32, i32, i32) {
    %c0_i32 = arith.constant 0 : i32
    %c0_i32_0 = arith.constant 0 : i32
    %c0_i32_1 = arith.constant 0 : i32
    %c0_i32_2 = arith.constant 0 : i32
    return %c0_i32, %c0_i32_0, %c0_i32_1 : i32, i32, i32
  }
  func.func @transform_6(%arg0: i32) -> (i32, i32, i32) {
    %c0_i32 = arith.constant 0 : i32
    %c0_i32_0 = arith.constant 0 : i32
    %c0_i32_1 = arith.constant 0 : i32
    %c0_i32_2 = arith.constant 0 : i32
    return %c0_i32, %c0_i32_0, %c0_i32_1 : i32, i32, i32
  }
  func.func @transform_7(%arg0: i32) -> (i32, i32, i32) {
    %c0_i32 = arith.constant 0 : i32
    %c0_i32_0 = arith.constant 0 : i32
    %c0_i32_1 = arith.constant 0 : i32
    %c0_i32_2 = arith.constant 0 : i32
    return %c0_i32, %c0_i32_0, %c0_i32_1 : i32, i32, i32
  }
  func.func @transform_8(%arg0: i32) -> (i32, i32, i32) {
    %c0_i32 = arith.constant 0 : i32
    %c0_i32_0 = arith.constant 0 : i32
    %c0_i32_1 = arith.constant 0 : i32
    %c0_i32_2 = arith.constant 0 : i32
    return %c0_i32, %c0_i32_0, %c0_i32_1 : i32, i32, i32
  }
  func.func @transform_9(%arg0: i32) -> (i32, i32, i32) {
    %c0_i32 = arith.constant 0 : i32
    %c0_i32_0 = arith.constant 0 : i32
    %c0_i32_1 = arith.constant 0 : i32
    %c0_i32_2 = arith.constant 0 : i32
    return %c0_i32, %c0_i32_0, %c0_i32_1 : i32, i32, i32
  }
  func.func @transform_10(%arg0: i32) -> (i32, i32, i32) {
    %c0_i32 = arith.constant 0 : i32
    %c0_i32_0 = arith.constant 0 : i32
    %c0_i32_1 = arith.constant 0 : i32
    %c0_i32_2 = arith.constant 0 : i32
    return %c0_i32, %c0_i32_0, %c0_i32_1 : i32, i32, i32
  }
  func.func @transform_11(%arg0: i32) -> (i32, i32, i32) {
    %c0_i32 = arith.constant 0 : i32
    %c0_i32_0 = arith.constant 0 : i32
    %c0_i32_1 = arith.constant 0 : i32
    %c0_i32_2 = arith.constant 0 : i32
    return %c0_i32, %c0_i32_0, %c0_i32_1 : i32, i32, i32
  }
  func.func @transform_12(%arg0: i32) -> (i32, i32, i32) {
    %c0_i32 = arith.constant 0 : i32
    %c0_i32_0 = arith.constant 0 : i32
    %c0_i32_1 = arith.constant 0 : i32
    %c0_i32_2 = arith.constant 0 : i32
    return %c0_i32, %c0_i32_0, %c0_i32_1 : i32, i32, i32
  }
  func.func @transform_13(%arg0: i32) -> (i32, i32, i32) {
    %c0_i32 = arith.constant 0 : i32
    %c0_i32_0 = arith.constant 0 : i32
    %c0_i32_1 = arith.constant 0 : i32
    %c0_i32_2 = arith.constant 0 : i32
    return %c0_i32, %c0_i32_0, %c0_i32_1 : i32, i32, i32
  }
  func.func @transform_14(%arg0: i32) -> (i32, i32, i32) {
    %c0_i32 = arith.constant 0 : i32
    %c0_i32_0 = arith.constant 0 : i32
    %c0_i32_1 = arith.constant 0 : i32
    %c0_i32_2 = arith.constant 0 : i32
    return %c0_i32, %c0_i32_0, %c0_i32_1 : i32, i32, i32
  }
  func.func @transform_15(%arg0: i32) -> (i32, i32, i32) {
    %c0_i32 = arith.constant 0 : i32
    %c0_i32_0 = arith.constant 0 : i32
    %c0_i32_1 = arith.constant 0 : i32
    %c0_i32_2 = arith.constant 0 : i32
    return %c0_i32, %c0_i32_0, %c0_i32_1 : i32, i32, i32
  }
  func.func @transform_16(%arg0: i32) -> (i32, i32, i32) {
    %c0_i32 = arith.constant 0 : i32
    %c0_i32_0 = arith.constant 0 : i32
    %c0_i32_1 = arith.constant 0 : i32
    %c0_i32_2 = arith.constant 0 : i32
    return %c0_i32, %c0_i32_0, %c0_i32_1 : i32, i32, i32
  }
  func.func @transform_17(%arg0: i32) -> (i32, i32, i32) {
    %c0_i32 = arith.constant 0 : i32
    %c0_i32_0 = arith.constant 0 : i32
    %c0_i32_1 = arith.constant 0 : i32
    %c0_i32_2 = arith.constant 0 : i32
    return %c0_i32, %c0_i32_0, %c0_i32_1 : i32, i32, i32
  }
  func.func @transform_18(%arg0: i32) -> (i32, i32, i32) {
    %c0_i32 = arith.constant 0 : i32
    %c0_i32_0 = arith.constant 0 : i32
    %c0_i32_1 = arith.constant 0 : i32
    %c0_i32_2 = arith.constant 0 : i32
    return %c0_i32, %c0_i32_0, %c0_i32_1 : i32, i32, i32
  }
  func.func @transform_19(%arg0: i32) -> (i32, i32) {
    %c0_i32 = arith.constant 0 : i32
    %c0_i32_0 = arith.constant 0 : i32
    %c0_i32_1 = arith.constant 0 : i32
    return %c0_i32, %c0_i32_0 : i32, i32
  }
  func.func @transform_20(%arg0: i32) -> (i32, i32) {
    %c0_i32 = arith.constant 0 : i32
    %c0_i32_0 = arith.constant 0 : i32
    %c0_i32_1 = arith.constant 0 : i32
    return %c0_i32, %c0_i32_0 : i32, i32
  }
  func.func @transform_21(%arg0: i32) -> (i32, i32) {
    %c0_i32 = arith.constant 0 : i32
    %c0_i32_0 = arith.constant 0 : i32
    %c0_i32_1 = arith.constant 0 : i32
    return %c0_i32, %c0_i32_0 : i32, i32
  }
  func.func @transform_22(%arg0: i32) -> (i32, i32, i32, i32) {
    %c0_i32 = arith.constant 0 : i32
    %c0_i32_0 = arith.constant 0 : i32
    %c0_i32_1 = arith.constant 0 : i32
    %c0_i32_2 = arith.constant 0 : i32
    return %arg0, %c0_i32, %c0_i32_0, %c0_i32_1 : i32, i32, i32, i32
  }
}

</mosaic_0001>

<bundles_post_ra>
// kernel: tpu_custom_call.1
= control target key start
LH: loop header
LB: loop body
LE: loop exit
PB: predicated region body
PF: predicated region fallthrough
CT: control target
= control target key end

     0   :  { %s5377_s0 = inlined_call_operand.vmem [shape: f32[2,8,8,128], index: 0, kind: input, shape index: {}]   ;;  %s5378_s1 = inlined_call_operand.hbm [shape: f32[128,128], index: 1, kind: input, shape index: {}]   ;;  %s5379_s2 = inlined_call_operand.vmem [shape: f32[1,128], index: 2, kind: input, shape index: {}]   ;;  %s5380_s3 = inlined_call_operand.vmem [shape: f32[1,128], index: 3, kind: input, shape index: {}]   ;;  %s5381_s4 = inlined_call_operand.hbm [shape: f32[1,64,128], index: 4, kind: input, shape index: {}]   ;;  %s5382_s5 = inlined_call_operand.hbm [shape: f32[1,1,128], index: 5, kind: input, shape index: {}]   ;;  %s5383_s6 = inlined_call_operand.hbm [shape: f32[1,1,128], index: 6, kind: input, shape index: {}]   ;;  %s5384_s7 = inlined_call_operand.vmem [shape: f32[1,9,64], index: 7, kind: input, shape index: {}]   ;;  %s5385_s8 = inlined_call_operand.hbm [shape: f32[1,1,64], index: 8, kind: input, shape index: {}]   ;;  %s5386_s9 = inlined_call_operand.hbm [shape: f32[1,1,64], index: 9, kind: input, shape index: {}]   ;;  %s5387_s10 = inlined_call_operand.hbm [shape: f32[1,64,64], index: 10, kind: input, shape index: {}]   ;;  %s5388_s11 = inlined_call_operand.hbm [shape: f32[1,1,64], index: 11, kind: input, shape index: {}]   ;;  %s5389_s12 = inlined_call_operand.vmem [shape: f32[1,1,64], index: 12, kind: input, shape index: {}]   ;;  %s5390_s13 = inlined_call_operand.hbm [shape: f32[1,64,128], index: 13, kind: input, shape index: {}]   ;;  %s5391_s14 = inlined_call_operand.vmem [shape: f32[1,1,128], index: 14, kind: input, shape index: {}]   ;;  %s5392_s15 = inlined_call_operand.vmem [shape: f32[1,1,128], index: 15, kind: input, shape index: {}]   ;;  %s5393_s16 = inlined_call_operand.vmem [shape: f32[1,128,64], index: 16, kind: input, shape index: {}]   ;;  %s5394_s17 = inlined_call_operand.vmem [shape: f32[1,1,64], index: 17, kind: input, shape index: {}]   ;;  %s5395_s18 = inlined_call_operand.vmem [shape: f32[1,1,64], index: 18, kind: input, shape index: {}]   ;;  %s5396_s19 = inlined_call_operand.vmem [shape: f32[128,128], index: 19, kind: input, shape index: {}]   ;;  %s5397_s20 = inlined_call_operand.vmem [shape: f32[1,128], index: 20, kind: input, shape index: {}]   ;;  %s5398_s21 = inlined_call_operand.vmem [shape: f32[1,128], index: 21, kind: input, shape index: {}]   ;;  %s5399_s22 = inlined_call_operand.hbm [shape: f32[2,8,8,128], index: 22, kind: output, shape index: {}]  }
   0x1   :  { %5421 = sst [smem:[#allocation33_spill]] %s5377_s0 }
   0x2   :  { %5422 = sst [smem:[#allocation34_spill]] %s5378_s1 }
   0x3   :  { %5423 = sst [smem:[#allocation35_spill]] %s5379_s2 }
   0x4   :  { %5424 = sst [smem:[#allocation36_spill]] %s5380_s3 }
   0x5   :  { %5425 = sst [smem:[#allocation37_spill]] %s5381_s4 }
   0x6   :  { %5426 = sst [smem:[#allocation38_spill]] %s5382_s5 }
   0x7   :  { %5427 = sst [smem:[#allocation39_spill]] %s5383_s6 }
   0x8   :  { %5428 = sst [smem:[#allocation40_spill]] %s5386_s9 }
   0x9   :  { %5429 = sst [smem:[#allocation41_spill]] %s5388_s11 }
   0xa   :  { %5430 = sst [smem:[#allocation42_spill]] %s5394_s17 }
   0xb   :  { %5431 = sst [smem:[#allocation43_spill]] %s5395_s18 }
   0xc   :  { %5432 = sst [smem:[#allocation44_spill]] %s5397_s20 }
   0xd   :  { %5433 = sst [smem:[#allocation45_spill]] %s5398_s21 }
   0xe   :  { %5434 = sst [smem:[#allocation46_spill]] %s5399_s22 }
   0xf   :  { %27 = vsyncpa [#allocation4], 0 }
  0x10   :  { %28 = vsyncpa [#allocation7], 0 }
  0x11   :  { %29 = vsyncpa [#allocation10], 0 }
  0x12   :  { %30 = vsyncpa [#allocation13], 0 }
  0x13   :  { %31 = vsyncpa [#allocation16], 0 }
  0x14   :  { %32 = vsyncpa [#allocation5], 0 }
  0x15   :  { %34 = vsyncpa [#allocation5 + $0x1], 0  ;;  %s4424_s3 = smov 0   ;;  %s4426_s28 = smov 0  }
  0x16   :  { %s4428_s29 = smov 0   ;;  %s4430_s30 = smov 0  }
  0x17 LB: > { %5435 = sst [smem:[#allocation25_spill]] %s4278_s3  ;;  %s4445_s4 = sadd.s32 4294967295, %s4290_s30   ;;  %s4290_s30 = sphi %s4430_s30, %s5485_s30   ;;  %s4286_s29 = sphi %s4428_s29, %s5488_s29   ;;  %s4282_s28 = sphi %s4426_s28, %s5487_s28   ;;  %s4278_s3 = sphi %s4424_s3, %s5486_s3  }
  0x18   : > { %5436 = sst [smem:[#allocation26_spill]] %s4282_s28  ;;  %s2944_s0 = sadd.s32 4294967294, %s4290_s30  }
  0x19   : > { %5437 = sst [smem:[#allocation27_spill]] %s4286_s29  ;;  %s4449_s23 = sadd.s32 1, %s4290_s30  }
  0x1a   : > { %5438 = sst [smem:[#allocation28_spill]] %s4290_s30  ;;  %s514_s1 = sadd.s32 1, %s4286_s29 }
  0x1b   : > { %5439 = sst [smem:[#allocation29_spill]] %s4449_s23  ;;  %s511_s5 = ssub.s32 %s4290_s30, %s4449_s23 }
  0x1c   : > { %p524_p0 = scmp.ne.s32.totalorder %s4286_s29, %s4282_s28  ;;  %p512_p1 = scmp.eq.s32.totalorder %s511_s5, 0 }
  0x1d   : > { %p525_p2 = scmp.eq.s32.totalorder %s4445_s4, 1  ;;  %p530_p3 = scmp.ne.s32.totalorder %s4282_s28, %s4278_s3 }
  0x1e   : > { %p531_p4 = scmp.eq.s32.totalorder %s2944_s0, 1  ;;  %p2945_p7 = scmp.ge.s32.totalorder %s4290_s30, 1 }
  0x1f   : > { %s4460_s24 = scalar_select %p512_p1, %s4286_s29, %s514_s1  }
  0x20   : > { %p4462_p5 = por %p525_p2, %p524_p0  ;;  %p4466_p6 = por %p531_p4, %p530_p3 }
  0x21   : > { %5440 = sst [smem:[#allocation30_spill]] %s4460_s24  ;;  %p538_p8 = scmp.lt.s32.totalorder %s4290_s30, 3 }
  0x22   : > { %s5441_s6 = scalar_select %p4462_p5, 1, 0 }
  0x23   : > { %s5443_s25 = scalar_select %p4466_p6, 1, 0 }
  0x24   : > { %5442 = sst [smem:[#allocation31_spill]] %s5441_s6  ;;  %p5415_p9 = scmp.eq.s32.totalorder %s4445_s4, 0 }
  0x25   : > { %5444 = sst [smem:[#allocation32_spill]] %s5443_s25  ;;  %p4473_p10 = pnand %p2945_p7, %p538_p8 }
  0x26   : > { %s4292_s2 = smov [#allocation6]   ;;  %s4293_s1 = smov [#allocation9]  }
  0x27   : > { %s5445_s26 = scalar_select %p4473_p10, 1, 0 }
  0x28   : > { %p3709_p11 = pneg %p4473_p10  ;;  %s569_s27 = sshll.u32 %s4292_s2, 4  ;;  %s4479_s27 = int_to_ptr.vmem [resolvable:$true] %s569_s27 }
  0x29   : > { %s594_s5 = sshll.u32 %s4293_s1, 4  ;;  %s4294_s24 = smov [#allocation12]   ;;  %s4487_s5 = int_to_ptr.vmem [resolvable:$true] %s594_s5 }
  0x2a   : > { %p4483_p12 = pnand %p5415_p9, %p3709_p11  ;;  %s4489_s29 = sshll.u32 %s4294_s24, 4  ;;  %s620_s29 = int_to_ptr.vmem [resolvable:$true] %s4489_s29 }
  0x2b   : > { %s5447_s3 = sld [smem:[#allocation37_spill]] }
  0x2c   : > { %p4499_p0 = pneg %p4483_p12 }
  0x31   : > { %s5448_s22 = smov %s5447_s3  ;;  %s3956_s30 = scalar_lea.hbm %s5447_s3, 1024 }
  0x32   : > { %p3957_p13 = scmp.ne.s32.totalorder %s5448_s22, %s3956_s30  ;;  %p3963_p3 = scmp.lt.u32.totalorder %s3956_s30, %s5448_s22 }
  0x34   : > { %p3959_p1 = pnand %p4499_p0, %p3957_p13 }
  0x36   : > { %p3960_p2 = pneg %p3959_p1 }
  0x38   : > { %p3965_p4 = pnand %p3963_p3, %p3960_p2 }
  0x3a   : > { %3968 = shalt.err (!%p3965_p4)
}
  0x3b   : > { %s3969_s3 = scalar_lea.vmem %s4479_s27, 1024  ;;  %p3977_p9 = scmp.lt.s32.totalorder %s4479_s27, %s4479_s27 }
  0x3c   : > { %p3970_p7 = scmp.ne.s32.totalorder %s4479_s27, %s3969_s3  ;;  %p3978_p6 = scmp.lt.s32.totalorder %s3969_s3, %s3969_s3 }
  0x3e   : > { %p3972_p8 = pnand %p3970_p7, %p4499_p0  ;;  %p3979_p13 = por %p3978_p6, %p3977_p9 }
  0x40   : > { %p3973_p11 = pneg %p3972_p8 }
  0x42   : > { %p3980_p1 = pnand %p3979_p13, %p3973_p11 }
  0x44   : > { %3983 = shalt.err (!%p3980_p1)
}
  0x45   : > { %s5418_s23 = smov 128   ;;  %s4296_s30 = smov 8  }
  0x46   : > { %3715 = dma.hbm_to_vmem [thread:$0]  (!%p4483_p12), %s5448_s22, 1024, %s4479_s27, [#allocation7], %s5418_s23, %s5418_s23, %s4296_s30  }
  0x47   : > { %s5450_s24 = sld [smem:[#allocation39_spill]] }
  0x4d   : > { %s3984_s3 = scalar_lea.hbm %s5450_s24, 16 }
  0x4e   : > { %p3985_p6 = scmp.ne.s32.totalorder %s5450_s24, %s3984_s3  ;;  %p3991_p3 = scmp.lt.u32.totalorder %s3984_s3, %s5450_s24 }
  0x50   : > { %p3987_p9 = pnand %p3985_p6, %p4499_p0 }
  0x52   : > { %p3988_p2 = pneg %p3987_p9 }
  0x54   : > { %p3993_p4 = pnand %p3991_p3, %p3988_p2 }
  0x56   : > { %3996 = shalt.err (!%p3993_p4)
}
  0x57   : > { %s3997_s27 = scalar_lea.vmem %s4487_s5, 16  ;;  %s4004_s20 = scalar_lea.vmem %s4487_s5, 32 }
  0x58   : > { %p3998_p7 = scmp.ne.s32.totalorder %s4487_s5, %s3997_s27  ;;  %p4005_p13 = scmp.lt.s32.totalorder %s4487_s5, %s4487_s5 }
  0x59   : > { %p4006_p1 = scmp.lt.s32.totalorder %s4004_s20, %s3997_s27 }
  0x5a   : > { %p4000_p8 = pnand %p3998_p7, %p4499_p0 }
  0x5b   : > { %p4007_p6 = por %p4006_p1, %p4005_p13 }
  0x5c   : > { %p4001_p11 = pneg %p4000_p8 }
  0x5e   : > { %p4008_p9 = pnand %p4007_p6, %p4001_p11 }
  0x60   : > { %4011 = shalt.err (!%p4008_p9)
}
  0x61   : > { %3721 = dma.hbm_to_vmem [thread:$0]  (!%p4483_p12), %s5450_s24, 16, %s4487_s5, [#allocation10]  }
  0x62   : > { %s5451_s9 = sld [smem:[#allocation40_spill]] }
  0x68   : > { %s4012_s25 = scalar_lea.hbm %s5451_s9, 16 }
  0x69   : > { %p4013_p2 = scmp.ne.s32.totalorder %s5451_s9, %s4012_s25  ;;  %p4019_p7 = scmp.lt.u32.totalorder %s4012_s25, %s5451_s9 }
  0x6b   : > { %p4015_p3 = pnand %p4013_p2, %p4499_p0 }
  0x6d   : > { %p4016_p4 = pneg %p4015_p3 }
  0x6f   : > { %p4021_p8 = pnand %p4019_p7, %p4016_p4 }
  0x71   : > { %4024 = shalt.err (!%p4021_p8)
}
  0x72   : > { %s4025_s20 = scalar_lea.vmem %s620_s29, 16  ;;  %s4032_s5 = scalar_lea.vmem %s620_s29, 32 }
  0x73   : > { %p4026_p11 = scmp.ne.s32.totalorder %s620_s29, %s4025_s20  ;;  %p4033_p6 = scmp.lt.s32.totalorder %s620_s29, %s620_s29 }
  0x74   : > { %p4034_p9 = scmp.lt.s32.totalorder %s4032_s5, %s4025_s20 }
  0x75   : > { %p4028_p13 = pnand %p4026_p11, %p4499_p0 }
  0x76   : > { %p4035_p5 = por %p4034_p9, %p4033_p6 }
  0x77   : > { %p4029_p1 = pneg %p4028_p13 }
  0x79   : > { %p4036_p10 = pnand %p4035_p5, %p4029_p1 }
  0x7b   : > { %4039 = shalt.err (!%p4036_p10)
}
  0x7c   : > { %3727 = dma.hbm_to_vmem [thread:$0]  (!%p4483_p12), %s5451_s9, 16, %s620_s29, [#allocation13]  }
  0x7d   : > { %s4297_s21 = smov [#allocation15]   ;;  %s4298_s25 = smov [#allocation3]  }
  0x7e   : > { %s643_s6 = sshll.u32 %s4297_s21, 4  ;;  %s550_s2 = sshll.u32 %s4298_s25, 4  ;;  %s644_s6 = int_to_ptr.vmem [resolvable:$true] %s643_s6  ;;  %s551_s2 = int_to_ptr.vmem [resolvable:$true] %s550_s2 }
  0x7f   : > { %s5452_s11 = sld [smem:[#allocation41_spill]] }
  0x85   : > { %s4040_s27 = scalar_lea.hbm %s5452_s11, 16 }
  0x86   : > { %p4041_p5 = scmp.ne.s32.totalorder %s5452_s11, %s4040_s27  ;;  %p4047_p3 = scmp.lt.u32.totalorder %s4040_s27, %s5452_s11 }
  0x88   : > { %p4043_p10 = pnand %p4041_p5, %p4499_p0 }
  0x8a   : > { %p4044_p2 = pneg %p4043_p10 }
  0x8c   : > { %p4049_p4 = pnand %p4047_p3, %p4044_p2 }
  0x8e   : > { %4052 = shalt.err (!%p4049_p4)
}
  0x8f   : > { %s4053_s29 = scalar_lea.vmem %s644_s6, 16  ;;  %s4060_s18 = scalar_lea.vmem %s644_s6, 32 }
  0x90   : > { %p4054_p7 = scmp.ne.s32.totalorder %s644_s6, %s4053_s29  ;;  %p4061_p13 = scmp.lt.s32.totalorder %s644_s6, %s644_s6 }
  0x91   : > { %p4062_p1 = scmp.lt.s32.totalorder %s4060_s18, %s4053_s29 }
  0x92   : > { %p4056_p8 = pnand %p4054_p7, %p4499_p0 }
  0x93   : > { %p4063_p6 = por %p4062_p1, %p4061_p13 }
  0x94   : > { %p4057_p11 = pneg %p4056_p8 }
  0x96   : > { %p4064_p9 = pnand %p4063_p6, %p4057_p11 }
  0x98   : > { %4067 = shalt.err (!%p4064_p9)
}
  0x99   : > { %3733 = dma.hbm_to_vmem [thread:$0]  (!%p4483_p12), %s5452_s11, 16, %s644_s6, [#allocation16]  }
  0x9a   : > { %s5453_s3 = sld [smem:[#allocation34_spill]] }
  0xa0   : > { %s5454_s27 = smov %s5453_s3  ;;  %s4068_s20 = scalar_lea.hbm %s5453_s3, 2048 }
  0xa1   : > { %p4069_p5 = scmp.ne.s32.totalorder %s5454_s27, %s4068_s20  ;;  %p4075_p3 = scmp.lt.u32.totalorder %s4068_s20, %s5454_s27 }
  0xa3   : > { %p4071_p10 = pnand %p4069_p5, %p4499_p0 }
  0xa5   : > { %p4072_p2 = pneg %p4071_p10 }
  0xa7   : > { %p4077_p4 = pnand %p4075_p3, %p4072_p2 }
  0xa9   : > { %4080 = shalt.err (!%p4077_p4)
}
  0xaa   : > { %s4081_s21 = scalar_lea.vmem %s551_s2, 2048  ;;  %p4089_p13 = scmp.lt.s32.totalorder %s551_s2, %s551_s2 }
  0xab   : > { %p4082_p7 = scmp.ne.s32.totalorder %s551_s2, %s4081_s21  ;;  %p4090_p1 = scmp.lt.s32.totalorder %s4081_s21, %s4081_s21 }
  0xad   : > { %p4084_p8 = pnand %p4082_p7, %p4499_p0  ;;  %p4091_p6 = por %p4090_p1, %p4089_p13 }
  0xaf   : > { %p4085_p11 = pneg %p4084_p8 }
  0xb1   : > { %p4092_p9 = pnand %p4091_p6, %p4085_p11 }
  0xb3   : > { %4095 = shalt.err (!%p4092_p9)
}
  0xb4   : > { %s5455_s6 = smov 128   ;;  %s4299_s1 = smov [#allocation8]  }
  0xb5   : > { %3712 = dma.hbm_to_vmem [thread:$0]  (!%p4483_p12), %s5454_s27, 2048, %s551_s2, [#allocation4], %s5455_s6, %s5455_s6, %s4296_s30  }
  0xb6   : > { %s583_s3 = sshll.u32 %s4299_s1, 4  ;;  %s4300_s20 = smov [#allocation11]   ;;  %s584_s3 = int_to_ptr.vmem [resolvable:$true] %s583_s3 }
  0xb7   : > { %s608_s5 = sshll.u32 %s4300_s20, 4  ;;  %s5456_s18 = sld [smem:[#allocation38_spill]]  ;;  %s609_s5 = int_to_ptr.vmem [resolvable:$true] %s608_s5 }
  0xbd   : > { %s4096_s21 = scalar_lea.hbm %s5456_s18, 16 }
  0xbe   : > { %p4097_p5 = scmp.ne.s32.totalorder %s5456_s18, %s4096_s21  ;;  %p4103_p3 = scmp.lt.u32.totalorder %s4096_s21, %s5456_s18 }
  0xc0   : > { %p4099_p10 = pnand %p4097_p5, %p4499_p0 }
  0xc2   : > { %p4100_p2 = pneg %p4099_p10 }
  0xc4   : > { %p4105_p4 = pnand %p4103_p3, %p4100_p2 }
  0xc6   : > { %4108 = shalt.err (!%p4105_p4)
}
  0xc7   : > { %s4109_s2 = scalar_lea.vmem %s584_s3, 16  ;;  %s4116_s23 = scalar_lea.vmem %s584_s3, 32 }
  0xc8   : > { %p4110_p7 = scmp.ne.s32.totalorder %s584_s3, %s4109_s2  ;;  %p4117_p13 = scmp.lt.s32.totalorder %s584_s3, %s584_s3 }
  0xc9   : > { %p4118_p1 = scmp.lt.s32.totalorder %s4116_s23, %s4109_s2 }
  0xca   : > { %p4112_p8 = pnand %p4110_p7, %p4499_p0 }
  0xcb   : > { %p4119_p6 = por %p4118_p1, %p4117_p13 }
  0xcc   : > { %p4113_p11 = pneg %p4112_p8 }
  0xce   : > { %p4120_p9 = pnand %p4119_p6, %p4113_p11 }
  0xd0   : > { %4123 = shalt.err (!%p4120_p9)
}
  0xd1   : > { %3718 = dma.hbm_to_vmem [thread:$0]  (!%p4483_p12), %s5456_s18, 16, %s584_s3, [#allocation7]  }
  0xd2   : > { %s4124_s20 = scalar_lea.hbm %s5385_s8, 16 }
  0xd3   : > { %p4125_p5 = scmp.ne.s32.totalorder %s5385_s8, %s4124_s20  ;;  %p4131_p3 = scmp.lt.u32.totalorder %s4124_s20, %s5385_s8 }
  0xd5   : > { %p4127_p10 = pnand %p4125_p5, %p4499_p0 }
  0xd7   : > { %p4128_p2 = pneg %p4127_p10 }
  0xd9   : > { %p4133_p4 = pnand %p4131_p3, %p4128_p2 }
  0xdb   : > { %4136 = shalt.err (!%p4133_p4)
}
  0xdc   : > { %s4137_s2 = scalar_lea.vmem %s609_s5, 16  ;;  %s4144_s3 = scalar_lea.vmem %s609_s5, 32 }
  0xdd   : > { %p4138_p7 = scmp.ne.s32.totalorder %s609_s5, %s4137_s2  ;;  %p4145_p13 = scmp.lt.s32.totalorder %s609_s5, %s609_s5 }
  0xde   : > { %p4146_p1 = scmp.lt.s32.totalorder %s4144_s3, %s4137_s2 }
  0xdf   : > { %p4140_p8 = pnand %p4138_p7, %p4499_p0 }
  0xe0   : > { %p4147_p6 = por %p4146_p1, %p4145_p13 }
  0xe1   : > { %p4141_p11 = pneg %p4140_p8 }
  0xe3   : > { %p4148_p9 = pnand %p4147_p6, %p4141_p11 }
  0xe5   : > { %4151 = shalt.err (!%p4148_p9)
}
  0xe6   : > { %3724 = dma.hbm_to_vmem [thread:$0]  (!%p4483_p12), %s5385_s8, 16, %s609_s5, [#allocation10]  }
  0xe7   : > { %s4301_s11 = smov [#allocation14]   ;;  %s4302_s1 = smov [#allocation17]  }
  0xe8   : > { %s629_s22 = sshll.u32 %s4301_s11, 4  ;;  %s656_s20 = sshll.u32 %s4302_s1, 4  ;;  %s630_s22 = int_to_ptr.vmem [resolvable:$true] %s629_s22  ;;  %s657_s20 = int_to_ptr.vmem [resolvable:$true] %s656_s20 }
  0xe9   : > { %s4152_s21 = scalar_lea.hbm %s5387_s10, 1024 }
  0xea   : > { %p4153_p5 = scmp.ne.s32.totalorder %s5387_s10, %s4152_s21  ;;  %p4159_p3 = scmp.lt.u32.totalorder %s4152_s21, %s5387_s10 }
  0xec   : > { %p4155_p10 = pnand %p4153_p5, %p4499_p0 }
  0xee   : > { %p4156_p2 = pneg %p4155_p10 }
  0xf0   : > { %p4161_p4 = pnand %p4159_p3, %p4156_p2 }
  0xf2   : > { %4164 = shalt.err (!%p4161_p4)
}
  0xf3   : > { %s4165_s5 = scalar_lea.vmem %s630_s22, 1024  ;;  %p4173_p13 = scmp.lt.s32.totalorder %s630_s22, %s630_s22 }
  0xf4   : > { %p4166_p7 = scmp.ne.s32.totalorder %s630_s22, %s4165_s5  ;;  %p4174_p1 = scmp.lt.s32.totalorder %s4165_s5, %s4165_s5 }
  0xf6   : > { %p4168_p8 = pnand %p4166_p7, %p4499_p0  ;;  %p4175_p6 = por %p4174_p1, %p4173_p13 }
  0xf8   : > { %p4169_p11 = pneg %p4168_p8 }
  0xfa   : > { %p4176_p9 = pnand %p4175_p6, %p4169_p11 }
  0xfc   : > { %4179 = shalt.err (!%p4176_p9)
}
  0xfd   : > { %3730 = dma.hbm_to_vmem [thread:$0]  (!%p4483_p12), %s5387_s10, 1024, %s630_s22, [#allocation13], %s5455_s6, %s5455_s6, %s4296_s30  }
  0xfe   : > { %s4180_s29 = scalar_lea.hbm %s5390_s13, 1024 }
  0xff   : > { %p4181_p5 = scmp.ne.s32.totalorder %s5390_s13, %s4180_s29  ;;  %p4187_p3 = scmp.lt.u32.totalorder %s4180_s29, %s5390_s13 }
 0x101   : > { %p4183_p10 = pnand %p4181_p5, %p4499_p0 }
 0x103   : > { %p4184_p2 = pneg %p4183_p10 }
 0x105   : > { %p4189_p4 = pnand %p4187_p3, %p4184_p2 }
 0x107   : > { %4192 = shalt.err (!%p4189_p4)
}
 0x108   : > { %s4193_s23 = scalar_lea.vmem %s657_s20, 1024  ;;  %p4201_p13 = scmp.lt.s32.totalorder %s657_s20, %s657_s20 }
 0x109   : > { %p4194_p7 = scmp.ne.s32.totalorder %s657_s20, %s4193_s23  ;;  %p4202_p1 = scmp.lt.s32.totalorder %s4193_s23, %s4193_s23 }
 0x10b   : > { %p4196_p8 = pnand %p4194_p7, %p4499_p0  ;;  %p4203_p6 = por %p4202_p1, %p4201_p13 }
 0x10d   : > { %p4197_p11 = pneg %p4196_p8 }
 0x10f   : > { %p4204_p9 = pnand %p4203_p6, %p4197_p11 }
 0x111   : > { %4207 = shalt.err (!%p4204_p9)
}
 0x112   : > { %3736 = dma.hbm_to_vmem [thread:$0]  (!%p4483_p12), %s5390_s13, 1024, %s657_s20, [#allocation16], %s5455_s6, %s5455_s6, %s4296_s30  }
 0x113   : > { %p5457_p5 = scmp.ne.s32.totalorder %s5445_s26, 0 }
 0x114   : > { %p5458_p0 = scmp.eq.s32.totalorder (!%p5457_p5), %s4445_s4, 0 }
 0x115   : > { %704 = sbr.rel (%p5457_p5) target bundleno = 3180 (0xc6c), region = 108 }
 0x11c   : > { %4253 = dma.done.wait (%p5458_p0), [#allocation4], 2048   ;;  %p5459_p10 = pmov %p5458_p0 }
 0x11d   : > { %p5460_p2 = pmov %p5458_p0 }
 0x11e   : > { %4255 = vsyncadd (%p5459_p10), [#allocation4], 4294965248 }
 0x11f   : > { %4257 = dma.done.wait (%p5460_p2), [#allocation7], 1040   ;;  %p5461_p3 = pmov %p5458_p0 }
 0x120   : > { %p5462_p4 = pmov %p5458_p0 }
 0x121   : > { %4259 = vsyncadd (%p5461_p3), [#allocation7], 4294966256 }
 0x122   : > { %4261 = dma.done.wait (%p5462_p4), [#allocation10], 32   ;;  %p5463_p12 = pmov %p5458_p0 }
 0x123   : > { %p5464_p7 = pmov %p5458_p0 }
 0x124   : > { %4263 = vsyncadd (%p5463_p12), [#allocation10], 4294967264 }
 0x125   : > { %4265 = dma.done.wait (%p5464_p7), [#allocation13], 1040   ;;  %p5465_p8 = pmov %p5458_p0 }
 0x126   : > { %p5466_p11 = pmov %p5458_p0 }
 0x127   : > { %4267 = vsyncadd (%p5465_p8), [#allocation13], 4294966256 }
 0x128   : > { %4269 = dma.done.wait (%p5466_p11), [#allocation16], 1040   ;;  %p5467_p13 = pmov %p5458_p0 }
 0x129   : > { %p798_p1 = scmp.lt.s32.totalorder %s4445_s4, 1  ;;  %v811_v0 = vld [vmem:[#allocation3] sm:$0xff]  ;;  %v812_v1 = vld [vmem:[#allocation3 + $0x8] sm:$0xff]  ;;  %v813_v2 = vld [vmem:[#allocation3 + $0x10] sm:$0xff]  ;;  %s5468_s6 = sld [smem:[#allocation33_spill]]  ;;  %vm1018_vm0 = vcmask 523264  }
 0x12a   : > { %4271 = vsyncadd (%p5467_p13), [#allocation16], 4294966256  ;;  %v3487_v3 = vpack.c.bf16 %v812_v1, %v811_v0  ;;  %v814_v4 = vld [vmem:[#allocation3 + $0x18] sm:$0xff]  ;;  %v815_v6 = vld [vmem:[#allocation3 + $0x20] sm:$0xff]  ;;  %s5469_s1 = sld [smem:[#allocation35_spill]]  ;;  %s5470_s21 = sld [smem:[#allocation36_spill]] }
 0x12b   : > { %s799_s28 = scalar_select %p798_p1, %s4445_s4, 1  ;;  %v3491_v5 = vpack.c.bf16 %v814_v4, %v813_v2  ;;  %v816_v7 = vld [vmem:[#allocation3 + $0x28] sm:$0xff]  ;;  %v817_v10 = vld [vmem:[#allocation3 + $0x30] sm:$0xff]  ;;  %v818_v11 = vld [vmem:[#allocation3 + $0x38] sm:$0xff]  ;;  %vm1247_vm1 = vcmask 261120   ;;  %vm1020_vm2 = vcmask 517120  }
 0x12c   : > { %3488 = vmatprep.subr.bf16.mxu0 %v3487_v3  ;;  %v3495_v8 = vpack.c.bf16 %v816_v7, %v815_v6  ;;  %v3499_v12 = vpack.c.bf16 %v818_v11, %v817_v10  ;;  %v819_v13 = vld [vmem:[#allocation3 + $0x40] sm:$0xff]  ;;  %v820_v14 = vld [vmem:[#allocation3 + $0x48] sm:$0xff]  ;;  %v821_v16 = vld [vmem:[#allocation3 + $0x50] sm:$0xff]  ;;  %s4303_s25 = smov 64   ;;  %s4304_s2 = smov 96  }
 0x12d   : > { %s3061_s26 = sshll.u32 %s799_s28, 6  ;;  %3490 = vmatpush3.bf16.msra.mxu0 %v3487_v3  ;;  %v3503_v15 = vpack.c.bf16 %v820_v14, %v819_v13  ;;  %v822_v17 = vld [vmem:[#allocation3 + $0x58] sm:$0xff]  ;;  %v823_v19 = vld [vmem:[#allocation3 + $0x60] sm:$0xff]  ;;  %v824_v20 = vld [vmem:[#allocation3 + $0x68] sm:$0xff]  ;;  %s5474_s11 = sld [smem:[#allocation43_spill]] }
 0x12e   : > { %3492 = vmatprep.subr.bf16.mxu0 %v3491_v5  ;;  %v3507_v18 = vpack.c.bf16 %v822_v17, %v821_v16  ;;  %v3511_v21 = vpack.c.bf16 %v824_v20, %v823_v19  ;;  %v825_v22 = vld [vmem:[#allocation3 + $0x70] sm:$0xff]  ;;  %v826_v23 = vld [vmem:[#allocation3 + $0x78] sm:$0xff]  ;;  %v1040_v32 = vld [vmem:[#allocation6] sm:$0xff]  ;;  %s5475_s17 = sld [smem:[#allocation44_spill]]  ;;  %s5477_s3 = sld [smem:[#allocation26_spill]] }
 0x12f   : > { %s4710_s20 = scalar_lea.vmem %s5468_s6, %s3061_s26  ;;  %v3515_v24 = vpack.c.bf16 %v826_v23, %v825_v22  ;;  %v1041_v33 = vld [vmem:[#allocation6 + $0x8] sm:$0xff]  ;;  %v1042_v34 = vld [vmem:[#allocation6 + $0x10] sm:$0xff]  ;;  %v1043_v36 = vld [vmem:[#allocation6 + $0x18] sm:$0xff]  ;;  %s5473_s6 = sld [smem:[#allocation42_spill]] }
 0x130   : > { %v803_v9 = vld [vmem:[%s4710_s20] sm:$0xff]  ;;  %v804_v25 = vld [vmem:[%s4710_s20 + $0x8] sm:$0xff]  ;;  %v805_v26 = vld [vmem:[%s4710_s20 + $0x10] sm:$0xff]  ;;  %v3519_v35 = vpack.c.bf16 %v1041_v33, %v1040_v32  ;;  %v3523_v37 = vpack.c.bf16 %v1043_v36, %v1042_v34  ;;  %s5478_s28 = sld [smem:[#allocation31_spill]]  ;;  %s3062_s26 = sshll.u32 %s4445_s4, 10 }
 0x131   : > { %3247 = vmatprep.mubr.f32.mxu0 %v803_v9  ;;  %3494 = vmatpush3.bf16.msra.mxu0 %v3491_v5  ;;  %v806_v27 = vld [vmem:[%s4710_s20 + $0x18] sm:$0xff]  ;;  %v807_v28 = vld [vmem:[%s4710_s20 + $0x20] sm:$0xff]  ;;  %v808_v29 = vld [vmem:[%s4710_s20 + $0x28] sm:$0xff] }
 0x132   : > { %3496 = vmatprep.subr.bf16.mxu0 %v3495_v8  ;;  %v809_v30 = vld [vmem:[%s4710_s20 + $0x30] sm:$0xff]  ;;  %v810_v31 = vld [vmem:[%s4710_s20 + $0x38] sm:$0xff]  ;;  %v1044_v38 = vld [vmem:[#allocation6 + $0x20] sm:$0xff]  ;;  %3520 = vmatprep.subr.bf16.mxu1 %v3519_v35  ;;  %s5479_s20 = sld [smem:[#allocation46_spill]] }
 0x133   : > { %v1045_v39 = vld [vmem:[#allocation6 + $0x28] sm:$0xff]  ;;  %3522 = vmatpush3.bf16.msra.mxu1 %v3519_v35  ;;  %v2969_v41 = vld [vmem:[%s5469_s1] ss:$0 sm:$0xff]  ;;  %v1047_v16 = vld [vmem:[#allocation6 + $0x38] sm:$0xff] }
 0x134   : > { %3524 = vmatprep.subr.bf16.mxu1 %v3523_v37  ;;  %v3527_v40 = vpack.c.bf16 %v1045_v39, %v1044_v38  ;;  %v2970_v43 = vld [vmem:[%s5470_s21] ss:$0 sm:$0xff]  ;;  %vm4827_vm3 = vmpackc.low %vm1247_vm1, %vm1247_vm1  ;;  %s795_s23 = sand.u32 1, %s5477_s3  }
 0x135   : > { %3498 = vmatpush3.bf16.msra.mxu0 %v3495_v8  ;;  %s2966_s22 = sshll.u32 %s795_s23, 6 }
 0x136   : > { %3500 = vmatprep.subr.bf16.mxu0 %v3499_v12  ;;  %s797_s5 = scalar_lea.vmem [#allocation18], %s2966_s22  ;;  %p5480_p9 = scmp.ne.s32.totalorder %s5478_s28, 0 }
 0x137   : > { %3526 = vmatpush3.bf16.msra.mxu1 %v3523_v37  ;;  %s2794_s0 = sshll.u32 %s797_s5, 4  ;;  %s5332_s0 = int_to_ptr.vmem [resolvable:$true] %s2794_s0 }
 0x138   : > { %3528 = vmatprep.subr.bf16.mxu1 %v3527_v40  ;;  %s5330_s9 = scalar_lea.hbm %s5479_s20, %s3062_s26  ;;  %s4208_s4 = scalar_lea.vmem %s5332_s0, 1024 }
 0x139   : > { %3502 = vmatpush3.bf16.msra.mxu0 %v3499_v12  ;;  %p4209_p6 = scmp.ne.s32.totalorder %s5332_s0, %s4208_s4 }
 0x13a   : > { %3504 = vmatprep.subr.bf16.mxu0 %v3503_v15 }
 0x13b   : > { %3530 = vmatpush3.bf16.msra.mxu1 %v3527_v40  ;;  %p4210_p5 = pnand %p4209_p6, %p5480_p9 }
 0x13d   : > { %3506 = vmatpush3.bf16.msra.mxu0 %v3503_v15  ;;  %v1046_v15 = vld [vmem:[#allocation6 + $0x30] sm:$0xff]  ;;  %p4211_p0 = pneg %p4210_p5 }
 0x13e   : > { %3508 = vmatprep.subr.bf16.mxu0 %v3507_v18 }
 0x141   : > { %3510 = vmatpush3.bf16.msra.mxu0 %v3507_v18  ;;  %v3531_v18 = vpack.c.bf16 %v1047_v16, %v1046_v15 }
 0x142   : > { %3512 = vmatprep.subr.bf16.mxu0 %v3511_v21 }
 0x143   : > { %3532 = vmatprep.subr.bf16.mxu1 %v3531_v18 }
 0x144   : > { %3534 = vmatpush3.bf16.msra.mxu1 %v3531_v18 }
 0x145   : > { %3514 = vmatpush3.bf16.msra.mxu0 %v3511_v21 }
 0x146   : > { %3516 = vmatprep.subr.bf16.mxu0 %v3515_v24 }
 0x149   : > { %3518 = vmatpush3.bf16.msra.mxu0 %v3515_v24 }
 0x14c   : > { %3248 = vmatmul.mubr.f32.vlgmr.msra.gmra.mrb[0].mxu0 %v804_v25 }
 0x14d   : > { %3250 = vmatprep.mubr.f32.mxu0 %v805_v26 }
 0x150   : > { %3251 = vmatmul.mubr.f32.gmra.mrb[2].mxu0 %v806_v27 }
 0x151   : > { %3253 = vmatprep.mubr.f32.mxu0 %v807_v28 }
 0x154   : > { %3254 = vmatmul.mubr.f32.gmra.mrb[4].mxu0 %v808_v29 }
 0x155   : > { %3256 = vmatprep.mubr.f32.mxu0 %v809_v30 }
 0x158   : > { %3257 = vmatmul.mubr.f32.gmra.mrb[6].mxu0 %v810_v31 }
 0x21f   : > { %v3249_v42 = vpop.f32.mrb[0].mxu0 }
 0x220   : > { %v940_v44 = vmul.f32 %v3249_v42, %v2969_v41  ;;  %v893_v45 = vpop.f32.mrb[1].mxu0 }
 0x221   : > { %v939_v46 = vmul.f32 %v2969_v41, %v893_v45 }
 0x222   : > { %v4726_v47 = vadd.f32 %v2970_v43, %v940_v44 }
 0x223   : > { %v954_v48 = vadd.f32 %v2970_v43, %v939_v46  ;;  %v3252_v49 = vpop.f32.mrb[2].mxu0 }
 0x224   : > { %v2972_v50 = vmul.f32 -1.442695, %v4726_v47  ;;  %v942_v51 = vmul.f32 %v3252_v49, %v2969_v41  ;;  %v903_v52 = vpop.f32.mrb[3].mxu0 }
 0x225   : > { %v2971_v53 = vmul.f32 -1.442695, %v954_v48  ;;  %v941_v54 = vmul.f32 %v2969_v41, %v903_v52 }
 0x226   : > { %3828 = vpow2.f32 %v2972_v50  ;;  %v4729_v55 = vadd.f32 %v2970_v43, %v942_v51 }
 0x227   : > { %3830 = vpow2.f32 %v2971_v53  ;;  %v956_v56 = vadd.f32 %v2970_v43, %v941_v54  ;;  %v3255_v57 = vpop.f32.mrb[4].mxu0  ;;  %v2987_v54 = vld [vmem:[#allocation8] ss:$0 sm:$0xff] }
 0x228   : > { %v2974_v58 = vmul.f32 -1.442695, %v4729_v55  ;;  %v944_v59 = vmul.f32 %v3255_v57, %v2969_v41  ;;  %v913_v60 = vpop.f32.mrb[5].mxu0 }
 0x229   : > { %v2973_v61 = vmul.f32 -1.442695, %v956_v56  ;;  %v943_v62 = vmul.f32 %v2969_v41, %v913_v60 }
 0x22a   : > { %3832 = vpow2.f32 %v2974_v58  ;;  %v4732_v63 = vadd.f32 %v2970_v43, %v944_v59 }
 0x22b   : > { %3834 = vpow2.f32 %v2973_v61  ;;  %v958_v0 = vadd.f32 %v2970_v43, %v943_v62  ;;  %v3258_v1 = vpop.f32.mrb[6].mxu0 }
 0x22c   : > { %v2976_v2 = vmul.f32 -1.442695, %v4732_v63  ;;  %v946_v3 = vmul.f32 %v3258_v1, %v2969_v41  ;;  %v923_v4 = vpop.f32.mrb[7].mxu0 }
 0x22d   : > { %v2975_v5 = vmul.f32 -1.442695, %v958_v0  ;;  %v945_v6 = vmul.f32 %v2969_v41, %v923_v4 }
 0x22e   : > { %3836 = vpow2.f32 %v2976_v2  ;;  %v961_v7 = vadd.f32 %v2970_v43, %v946_v3 }
 0x22f   : > { %3838 = vpow2.f32 %v2975_v5  ;;  %v960_v8 = vadd.f32 %v2970_v43, %v945_v6 }
 0x230   : > { %v3829_v9 = vpop.eup %3828  ;;  %v2978_v10 = vmul.f32 -1.442695, %v961_v7 }
 0x231   : > { %v3831_v11 = vpop.eup %3830  ;;  %v2977_v12 = vmul.f32 -1.442695, %v960_v8  ;;  %v987_v13 = vadd.f32 1.0, %v3829_v9 }
 0x232   : > { %v986_v14 = vadd.f32 1.0, %v3831_v11  ;;  %3840 = vpow2.f32 %v2978_v10 }
 0x234   : > { %v3833_v17 = vpop.eup %3832  ;;  %3842 = vrcp.f32 %v986_v14 }
 0x235   : > { %v3835_v19 = vpop.eup %3834  ;;  %3844 = vpow2.f32 %v2977_v12  ;;  %v989_v20 = vadd.f32 1.0, %v3833_v17 }
 0x236   : > { %3846 = vrcp.f32 %v987_v13  ;;  %v988_v21 = vadd.f32 1.0, %v3835_v19 }
 0x238   : > { %v3837_v22 = vpop.eup %3836  ;;  %3848 = vrcp.f32 %v988_v21 }
 0x239   : > { %v3839_v23 = vpop.eup %3838  ;;  %3850 = vrcp.f32 %v989_v20  ;;  %v991_v24 = vadd.f32 1.0, %v3837_v22 }
 0x23a   : > { %v990_v25 = vadd.f32 1.0, %v3839_v23 }
 0x23c   : > { %v3841_v26 = vpop.eup %3840  ;;  %3852 = vrcp.f32 %v990_v25 }
 0x23d   : > { %v993_v27 = vadd.f32 1.0, %v3841_v26  ;;  %3854 = vrcp.f32 %v991_v24 }
 0x23e   : > { %v3843_v28 = vpop.eup %3842 }
 0x23f   : > { %v3845_v29 = vpop.eup %3844  ;;  %v4735_v30 = vmul.f32 %v3843_v28, %v954_v48  ;;  %3856 = vrcp.f32 %v993_v27 }
 0x240   : > { %v3847_v31 = vpop.eup %3846  ;;  %v992_v32 = vadd.f32 1.0, %v3845_v29 }
 0x241   : > { %1056 = vrot.lane.b32.xlu0 %v4735_v30, %s4303_s25  ;;  %v4740_v34 = vmul.f32 %v3847_v31, %v4726_v47 }
 0x242   : > { %v3849_v33 = vpop.eup %3848  ;;  %3858 = vrcp.f32 %v992_v32 }
 0x243   : > { %v4742_v35 = vmul.f32 %v3849_v33, %v956_v56  ;;  %v3851_v36 = vpop.eup %3850  ;;  %v2988_v56 = vld [vmem:[#allocation9] ss:$0 sm:$0xff] }
 0x244   : > { %v4749_v38 = vmul.f32 %v3851_v36, %v4729_v55 }
 0x245   : > { %1058 = vrot.lane.b32.xlu0 %v4740_v34, %s4303_s25  ;;  %1060 = vrot.lane.b32.xlu1 %v4742_v35, %s4303_s25 }
 0x246   : > { %v3853_v37 = vpop.eup %3852 }
 0x247   : > { %v4751_v39 = vmul.f32 %v3853_v37, %v958_v0  ;;  %v3855_v40 = vpop.eup %3854 }
 0x248   : > { %v4758_v42 = vmul.f32 %v3855_v40, %v4732_v63 }
 0x249   : > { %1062 = vrot.lane.b32.xlu1 %v4749_v38, %s4303_s25  ;;  %1064 = vrot.lane.b32.xlu0 %v4751_v39, %s4303_s25  ;;  %v3857_v41 = vpop.eup %3856 }
 0x24a   : > { %v4766_v45 = vmul.f32 %v3857_v41, %v961_v7 }
 0x24c   : > { %v3859_v43 = vpop.eup %3858 }
 0x24d   : > { %1066 = vrot.lane.b32.xlu1 %v4758_v42, %s4303_s25  ;;  %v4762_v44 = vmul.f32 %v3859_v43, %v960_v8  ;;  %v4305_v8 = vmov 0.0  }
 0x24e   : > { %1022 = vst.msk [vmem:[#allocation2 + $0x10] sm:$0xff] %vm1018_vm0, %v4305_v8  ;;  %1019 = vst.msk [vmem:[#allocation2] sm:$0xff] %vm1018_vm0, %v4305_v8 }
 0x24f   : > { %1068 = vrot.lane.b32.xlu0 %v4762_v44, %s4303_s25  ;;  %1023 = vst.msk [vmem:[#allocation2 + $0x18] sm:$0x3] %vm1020_vm2, %v4305_v8  ;;  %1021 = vst.msk [vmem:[#allocation2 + $0x8] sm:$0x3] %vm1020_vm2, %v4305_v8 }
 0x250   : > { %1024 = vst.msk [vmem:[#allocation2 + $0x20] sm:$0xff] %vm1018_vm0, %v4305_v8  ;;  %1026 = vst.msk [vmem:[#allocation2 + $0x30] sm:$0xff] %vm1018_vm0, %v4305_v8 }
 0x251   : > { %1070 = vrot.lane.b32.xlu1 %v4766_v45, %s4303_s25  ;;  %1025 = vst.msk [vmem:[#allocation2 + $0x28] sm:$0x3] %vm1020_vm2, %v4305_v8  ;;  %1027 = vst.msk [vmem:[#allocation2 + $0x38] sm:$0x3] %vm1020_vm2, %v4305_v8 }
 0x252   : > { %1028 = vst.msk [vmem:[#allocation2 + $0x40] sm:$0xff] %vm1018_vm0, %v4305_v8  ;;  %1030 = vst.msk [vmem:[#allocation2 + $0x50] sm:$0xff] %vm1018_vm0, %v4305_v8 }
 0x253   : > { %1029 = vst.msk [vmem:[#allocation2 + $0x48] sm:$0x3] %vm1020_vm2, %v4305_v8  ;;  %1031 = vst.msk [vmem:[#allocation2 + $0x58] sm:$0x3] %vm1020_vm2, %v4305_v8 }
 0x254   : > { %1032 = vst.msk [vmem:[#allocation2 + $0x60] sm:$0xff] %vm1018_vm0, %v4305_v8  ;;  %1034 = vst.msk [vmem:[#allocation2 + $0x70] sm:$0xff] %vm1018_vm0, %v4305_v8 }
 0x255   : > { %1033 = vst.msk [vmem:[#allocation2 + $0x68] sm:$0x3] %vm1020_vm2, %v4305_v8  ;;  %1035 = vst.msk [vmem:[#allocation2 + $0x78] sm:$0x3] %vm1020_vm2, %v4305_v8 }
 0x256   : > { %1036 = vst.msk [vmem:[#allocation2 + $0x80] sm:$0xff] %vm1018_vm0, %v4305_v8  ;;  %1038 = vst.msk [vmem:[#allocation2 + $0x90] sm:$0xff] %vm1018_vm0, %v4305_v8 }
 0x257   : > { %1037 = vst.msk [vmem:[#allocation2 + $0x88] sm:$0x3] %vm1020_vm2, %v4305_v8  ;;  %1039 = vst.msk [vmem:[#allocation2 + $0x98] sm:$0x3] %vm1020_vm2, %v4305_v8 }
 0x2b3   : > { %v1057_v46 = vpop.permute.xlu0 %1056 }
 0x2b4   : > { %3275 = vmatprep.mubr.msk.f32.mxu1 %vm1018_vm0, %v1057_v46 }
 0x2b7   : > { %v1059_v47 = vpop.permute.xlu0 %1058  ;;  %v1061_v48 = vpop.permute.xlu1 %1060 }
 0x2b8   : > { %3276 = vmatmul.mubr.msk.f32.vlgmr.msra.gmra.mrb[0].mxu1 %vm1018_vm0, %v1059_v47 }
 0x2b9   : > { %3278 = vmatprep.mubr.msk.f32.mxu1 %vm1018_vm0, %v1061_v48 }
 0x2bb   : > { %v1063_v49 = vpop.permute.xlu1 %1062  ;;  %v1065_v50 = vpop.permute.xlu0 %1064 }
 0x2bc   : > { %3279 = vmatmul.mubr.msk.f32.gmra.mrb[2].mxu1 %vm1018_vm0, %v1063_v49 }
 0x2bd   : > { %3281 = vmatprep.mubr.msk.f32.mxu1 %vm1018_vm0, %v1065_v50 }
 0x2bf   : > { %v1067_v51 = vpop.permute.xlu1 %1066 }
 0x2c0   : > { %3282 = vmatmul.mubr.msk.f32.gmra.mrb[4].mxu1 %vm1018_vm0, %v1067_v51 }
 0x2c1   : > { %v1069_v52 = vpop.permute.xlu0 %1068 }
 0x2c2   : > { %3284 = vmatprep.mubr.msk.f32.mxu1 %vm1018_vm0, %v1069_v52 }
 0x2c3   : > { %v1071_v53 = vpop.permute.xlu1 %1070 }
 0x2c4   : > { %3285 = vmatmul.mubr.msk.f32.gmra.mrb[6].mxu1 %vm1018_vm0, %v1071_v53 }
 0x38b   : > { %v3277_v55 = vpop.f32.mrb[0].mxu1 }
 0x38c   : > { %v1201_v57 = vmul.f32 %v3277_v55, %v2987_v54  ;;  %v1154_v58 = vpop.f32.mrb[1].mxu1 }
 0x38d   : > { %v1200_v59 = vmul.f32 %v2987_v54, %v1154_v58 }
 0x38e   : > { %v4778_v60 = vadd.f32 %v2988_v56, %v1201_v57 }
 0x38f   : > { %v1215_v61 = vadd.f32 %v2988_v56, %v1200_v59  ;;  %v3280_v62 = vpop.f32.mrb[2].mxu1 }
 0x390   : > { %v1203_v63 = vmul.f32 %v3280_v62, %v2987_v54  ;;  %v1164_v0 = vpop.f32.mrb[3].mxu1 }
 0x391   : > { %v1202_v1 = vmul.f32 %v2987_v54, %v1164_v0  ;;  %3303 = vmatprep.mubr.msk.f32.mxu1 %vm1247_vm1, %v1215_v61  ;;  %v3808_v2 = vpack.i.bf16 %v4778_v60, %v1215_v61 }
 0x392   : > { %v4782_v3 = vadd.f32 %v2988_v56, %v1203_v63 }
 0x393   : > { %v4784_v4 = vadd.f32 %v2988_v56, %v1202_v1  ;;  %v3283_v5 = vpop.f32.mrb[4].mxu1  ;;  %3809 = vrot.lane.b32.xlu0 %v3808_v2, %s4304_s2 }
 0x394   : > { %v1205_v6 = vmul.f32 %v3283_v5, %v2987_v54  ;;  %v1174_v7 = vpop.f32.mrb[5].mxu1 }
 0x395   : > { %v1204_v9 = vmul.f32 %v2987_v54, %v1174_v7  ;;  %v3813_v10 = vpack.i.bf16 %v4782_v3, %v4784_v4 }
 0x396   : > { %v4809_v11 = vadd.f32 %v2988_v56, %v1205_v6 }
 0x397   : > { %v4811_v12 = vadd.f32 %v2988_v56, %v1204_v9  ;;  %3814 = vrot.lane.b32.xlu1 %v3813_v10, %s4304_s2  ;;  %v3286_v13 = vpop.f32.mrb[6].mxu1 }
 0x398   : > { %v1207_v14 = vmul.f32 %v3286_v13, %v2987_v54  ;;  %v1184_v15 = vpop.f32.mrb[7].mxu1 }
 0x399   : > { %v1206_v16 = vmul.f32 %v2987_v54, %v1184_v15  ;;  %v3818_v17 = vpack.i.bf16 %v4809_v11, %v4811_v12 }
 0x39a   : > { %v4816_v18 = vadd.f32 %v2988_v56, %v1207_v14 }
 0x39b   : > { %v4818_v19 = vadd.f32 %v2988_v56, %v1206_v16  ;;  %3819 = vrot.lane.b32.xlu0 %v3818_v17, %s4304_s2 }
 0x39d   : > { %v3823_v20 = vpack.i.bf16 %v4816_v18, %v4818_v19 }
 0x39f   : > { %3824 = vrot.lane.b32.xlu1 %v3823_v20, %s4304_s2  ;;  %s5476_s2 = sld [smem:[#allocation45_spill]] }
 0x3a3   : > { %1483 = vrot.lane.b32.xlu1 %v1215_v61, %s4303_s25 }
 0x405   : > { %v3810_v21 = vpop.permute.xlu0 %3809 }
 0x406   : > { %v3812_v22 = vunpack.i.h.bf16 %v3810_v21  ;;  %v3811_v23 = vunpack.i.l.bf16 %v3810_v21 }
 0x408   : > { %v3535_v25 = vpack.c.bf16 %v3812_v22, %v3811_v23 }
 0x409   : > { %v3815_v26 = vpop.permute.xlu1 %3814 }
 0x40a   : > { %v3817_v27 = vunpack.i.h.bf16 %v3815_v26  ;;  %v3816_v28 = vunpack.i.l.bf16 %v3815_v26  ;;  %3537 = vmatprep.subr.msk.bf16.mxu1 %vm4827_vm3, %v3535_v25 }
 0x40b   : > { %3540 = vmatpush3.bf16.xpose.msk.msra.mxu1 %vm4827_vm3, %v3535_v25 }
 0x40c   : > { %v3541_v29 = vpack.c.bf16 %v3817_v27, %v3816_v28 }
 0x40d   : > { %v3820_v31 = vpop.permute.xlu0 %3819 }
 0x40e   : > { %v3822_v32 = vunpack.i.h.bf16 %v3820_v31  ;;  %v3821_v33 = vunpack.i.l.bf16 %v3820_v31  ;;  %3543 = vmatprep.subr.msk.bf16.mxu1 %vm4827_vm3, %v3541_v29 }
 0x410   : > { %v3547_v37 = vpack.c.bf16 %v3822_v32, %v3821_v33 }
 0x411   : > { %v3825_v36 = vpop.permute.xlu1 %3824 }
 0x412   : > { %v3827_v41 = vunpack.i.h.bf16 %v3825_v36  ;;  %v3826_v43 = vunpack.i.l.bf16 %v3825_v36 }
 0x413   : > { %3546 = vmatpush3.bf16.xpose.msk.msra.mxu1 %vm4827_vm3, %v3541_v29 }
 0x414   : > { %3549 = vmatprep.subr.msk.bf16.mxu1 %vm4827_vm3, %v3547_v37  ;;  %v3553_v46 = vpack.c.bf16 %v3827_v41, %v3826_v43 }
 0x415   : > { %v4841_v40 = vpop.permute.xlu1 %1483 }
 0x416   : > { %1508 = vst.msk [vmem:[#allocation2 + $0x11] sm:$0xff] %vm1018_vm0, %v4841_v40 }
 0x41b   : > { %3552 = vmatpush3.bf16.xpose.msk.msra.mxu1 %vm4827_vm3, %v3547_v37 }
 0x41c   : > { %3555 = vmatprep.subr.msk.bf16.mxu1 %vm4827_vm3, %v3553_v46 }
 0x423   : > { %3558 = vmatpush3.bf16.xpose.msk.msra.mxu1 %vm4827_vm3, %v3553_v46 }
 0x42a   : > { %3304 = vmatmul.mubr.msk.f32.vlgmr.msra.gmra.mrb[8].mxu1 %vm1247_vm1, %v4778_v60 }
 0x42b   : > { %3306 = vmatprep.mubr.msk.f32.mxu1 %vm1247_vm1, %v4784_v4 }
 0x42e   : > { %3307 = vmatmul.mubr.msk.f32.gmra.mrb[10].mxu1 %vm1247_vm1, %v4782_v3 }
 0x42f   : > { %3309 = vmatprep.mubr.msk.f32.mxu1 %vm1247_vm1, %v4811_v12 }
 0x432   : > { %3310 = vmatmul.mubr.msk.f32.gmra.mrb[12].mxu1 %vm1247_vm1, %v4809_v11 }
 0x433   : > { %3312 = vmatprep.mubr.msk.f32.mxu1 %vm1247_vm1, %v4818_v19 }
 0x436   : > { %3313 = vmatmul.mubr.msk.f32.gmra.mrb[14].mxu1 %vm1247_vm1, %v4816_v18 }
 0x4fd   : > { %v3305_v47 = vpop.f32.mrb[8].mxu1 }
 0x4fe   : > { %v1386_v48 = vmul.f32 0.17677669, %v3305_v47  ;;  %v1346_v49 = vpop.f32.mrb[9].mxu1 }
 0x4ff   : > { %v1385_v50 = vmul.f32 0.17677669, %v1346_v49 }
 0x500   : > { %v1396_v51 = vsel %vm1018_vm0, %v1386_v48, -inf }
 0x501   : > { %1397 = vmax.xlane.f32.xlu1 %v1396_v51  ;;  %v3308_v52 = vpop.f32.mrb[10].mxu1  ;;  %v1393_v53 = vsel %vm1018_vm0, %v1385_v50, -inf }
 0x502   : > { %v1388_v54 = vmul.f32 0.17677669, %v3308_v52  ;;  %1394 = vmax.xlane.f32.xlu0 %v1393_v53  ;;  %v1356_v55 = vpop.f32.mrb[11].mxu1 }
 0x503   : > { %v1387_v57 = vmul.f32 0.17677669, %v1356_v55 }
 0x504   : > { %v1402_v56 = vsel %vm1018_vm0, %v1388_v54, -inf }
 0x505   : > { %v3311_v58 = vpop.f32.mrb[12].mxu1  ;;  %v1399_v0 = vsel %vm1018_vm0, %v1387_v57, -inf }
 0x506   : > { %1403 = vmax.xlane.f32.xlu0 %v1402_v56  ;;  %v1366_v59 = vpop.f32.mrb[13].mxu1  ;;  %v1390_v62 = vmul.f32 0.17677669, %v3311_v58 }
 0x507   : > { %v1389_v61 = vmul.f32 0.17677669, %v1366_v59 }
 0x508   : > { %v1408_v6 = vsel %vm1018_vm0, %v1390_v62, -inf }
 0x509   : > { %v3314_v63 = vpop.f32.mrb[14].mxu1  ;;  %v1405_v1 = vsel %vm1018_vm0, %v1389_v61, -inf }
 0x50a   : > { %1400 = vmax.xlane.f32.xlu0 %v1399_v0  ;;  %1406 = vmax.xlane.f32.xlu1 %v1405_v1  ;;  %v1376_v2 = vpop.f32.mrb[15].mxu1  ;;  %v1392_v5 = vmul.f32 0.17677669, %v3314_v63 }
 0x50b   : > { %v4880_v8 = vmul.f32 0.17677669, %v1376_v2 }
 0x50c   : > { %v1414_v7 = vsel %vm1018_vm0, %v1392_v5, -inf }
 0x50d   : > { %v1411_v9 = vsel %vm1018_vm0, %v4880_v8, -inf }
 0x50e   : > { %1409 = vmax.xlane.f32.xlu0 %v1408_v6 }
 0x512   : > { %1415 = vmax.xlane.f32.xlu0 %v1414_v7 }
 0x51b   : > { %1487 = vrot.lane.b32.xlu1 %v4784_v4, %s4303_s25 }
 0x51f   : > { %1491 = vrot.lane.b32.xlu1 %v4811_v12, %s4303_s25 }
 0x528   : > { %1485 = vrot.lane.b32.xlu0 %v4778_v60, %s4303_s25 }
 0x52c   : > { %1489 = vrot.lane.b32.xlu0 %v4782_v3, %s4303_s25 }
 0x543   : > { %1412 = vmax.xlane.f32.xlu1 %v1411_v9 }
 0x554   : > { %1493 = vrot.lane.b32.xlu1 %v4809_v11, %s4303_s25 }
 0x58e   : > { %v1398_v10 = vpop.xlane.xlu1 %1397 }
 0x58f   : > { %v1418_v4 = vsub.f32 %v1386_v48, %v1398_v10  ;;  %v1395_v13 = vpop.xlane.xlu0 %1394 }
 0x590   : > { %v1417_v14 = vsub.f32 %v1385_v50, %v1395_v13 }
 0x591   : > { %v1427_v12 = vmul.f32 1.442695, %v1418_v4 }
 0x592   : > { %v1425_v15 = vmul.f32 1.442695, %v1417_v14 }
 0x593   : > { %3860 = vpow2.f32 %v1427_v12  ;;  %v1404_v60 = vpop.xlane.xlu0 %1403  ;;  %v1921_v12 = vld [vmem:[#allocation14 + $0x8] sm:$0xff] }
 0x594   : > { %3862 = vpow2.f32 %v1425_v15  ;;  %v1420_v16 = vsub.f32 %v1388_v54, %v1404_v60 }
 0x596   : > { %v1431_v3 = vmul.f32 1.442695, %v1420_v16 }
 0x597   : > { %v1401_v17 = vpop.xlane.xlu0 %1400  ;;  %v1407_v20 = vpop.xlane.xlu1 %1406 }
 0x598   : > { %3864 = vpow2.f32 %v1431_v3  ;;  %v1419_v21 = vsub.f32 %v1387_v57, %v1401_v17  ;;  %v1421_v22 = vsub.f32 %v1389_v61, %v1407_v20  ;;  %v1922_v17 = vld [vmem:[#allocation14 + $0x10] sm:$0xff]  ;;  %v1923_v20 = vld [vmem:[#allocation14 + $0x18] sm:$0xff] }
 0x59a   : > { %v1429_v23 = vmul.f32 1.442695, %v1419_v21  ;;  %v1433_v24 = vmul.f32 1.442695, %v1421_v22 }
 0x59b   : > { %v1410_v25 = vpop.xlane.xlu0 %1409  ;;  %v1488_v11 = vpop.permute.xlu1 %1487 }
 0x59c   : > { %3866 = vpow2.f32 %v1429_v23  ;;  %v1422_v26 = vsub.f32 %v1390_v62, %v1410_v25  ;;  %1510 = vst.msk [vmem:[#allocation2 + $0x31] sm:$0xff] %vm1018_vm0, %v1488_v11  ;;  %v3579_v23 = vpack.c.bf16 %v1923_v20, %v1922_v17 }
 0x59d   : > { %v4887_v27 = vpop.eup %3860  ;;  %3868 = vpow2.f32 %v1433_v24 }
 0x59e   : > { %v3863_v28 = vpop.eup %3862  ;;  %v1435_v29 = vmul.f32 1.442695, %v1422_v26  ;;  %v1444_v31 = vsel %vm1018_vm0, %v4887_v27, 0.0  ;;  %v1925_v26 = vld [vmem:[#allocation14 + $0x28] sm:$0xff] }
 0x59f   : > { %v1492_v32 = vpop.permute.xlu1 %1491  ;;  %1445 = vadd.xlane.f32.xlu0 %v1444_v31  ;;  %v1416_v33 = vpop.xlane.xlu0 %1415  ;;  %v1441_v36 = vsel %vm1018_vm0, %v3863_v28, 0.0 }
 0x5a0   : > { %3870 = vpow2.f32 %v1435_v29  ;;  %1512 = vst.msk [vmem:[#allocation2 + $0x51] sm:$0xff] %vm1018_vm0, %v1492_v32  ;;  %v1424_v37 = vsub.f32 %v1392_v5, %v1416_v33  ;;  %1442 = vadd.xlane.f32.xlu1 %v1441_v36 }
 0x5a2   : > { %v4893_v41 = vpop.eup %3864  ;;  %v1439_v43 = vmul.f32 1.442695, %v1424_v37 }
 0x5a3   : > { %v1486_v46 = vpop.permute.xlu0 %1485  ;;  %v1450_v47 = vsel %vm1018_vm0, %v4893_v41, 0.0 }
 0x5a4   : > { %3872 = vpow2.f32 %v1439_v43  ;;  %1509 = vst.msk [vmem:[#allocation2 + $0x21] sm:$0xff] %vm1018_vm0, %v1486_v46  ;;  %v3559_v48 = vpack.c.bf16 %v1486_v46, %v4841_v40  ;;  %1451 = vadd.xlane.f32.xlu0 %v1450_v47  ;;  %v1926_v46 = vld [vmem:[#allocation14 + $0x30] sm:$0xff]  ;;  %v1927_v47 = vld [vmem:[#allocation14 + $0x38] sm:$0xff] }
 0x5a6   : > { %v4899_v49 = vpop.eup %3866  ;;  %3560 = vmatprep.subr.bf16.mxu0 %v3559_v48 }
 0x5a7   : > { %3562 = vmatpush3.bf16.msra.mxu0 %v3559_v48  ;;  %v1490_v50 = vpop.permute.xlu0 %1489  ;;  %v1447_v51 = vsel %vm1018_vm0, %v4899_v49, 0.0  ;;  %v4903_v52 = vpop.eup %3868  ;;  %v3587_v48 = vpack.c.bf16 %v1927_v47, %v1926_v46  ;;  %v4985_v47 = vld [vmem:[#allocation2 + $0x50] sm:$0xff] }
 0x5a8   : > { %1511 = vst.msk [vmem:[#allocation2 + $0x41] sm:$0xff] %vm1018_vm0, %v1490_v50  ;;  %v3563_v53 = vpack.c.bf16 %v1490_v50, %v1488_v11  ;;  %1448 = vadd.xlane.f32.xlu1 %v1447_v51  ;;  %v1453_v55 = vsel %vm1018_vm0, %v4903_v52, 0.0  ;;  %v1924_v11 = vld [vmem:[#allocation14 + $0x20] sm:$0xff] }
 0x5a9   : > { %v3583_v31 = vpack.c.bf16 %v1925_v26, %v1924_v11 }
 0x5aa   : > { %v4906_v54 = vpop.eup %3870  ;;  %3564 = vmatprep.subr.bf16.mxu0 %v3563_v53 }
 0x5ab   : > { %3566 = vmatpush3.bf16.msra.mxu0 %v3563_v53  ;;  %v1456_v40 = vsel %vm1018_vm0, %v4906_v54, 0.0  ;;  %v1481_v53 = vld [vmem:[%s5384_s7] sm:$0xff] }
 0x5ac   : > { %1457 = vadd.xlane.f32.xlu0 %v1456_v40  ;;  %1454 = vadd.xlane.f32.xlu1 %v1453_v55  ;;  %v4972_v26 = vld [vmem:[#allocation2 + $0x22] sm:$0xff] }
 0x5ae   : > { %v4912_v56 = vpop.eup %3872 }
 0x5af   : > { %v1462_v57 = vsel %vm1018_vm0, %v4912_v56, 0.0 }
 0x5b0   : > { %1463 = vadd.xlane.f32.xlu0 %v1462_v57  ;;  %v1536_v57 = vld [vmem:[#allocation2 + $0x1] sm:$0xff] }
 0x5c6   : > { %1495 = vrot.lane.b32.xlu0 %v4818_v19, %s4303_s25 }
 0x5d0   : > { %v1413_v58 = vpop.xlane.xlu1 %1412 }
 0x5d1   : > { %v1423_v59 = vsub.f32 %v4880_v8, %v1413_v58 }
 0x5d3   : > { %v1437_v61 = vmul.f32 1.442695, %v1423_v59 }
 0x5d4   : > { %v1494_v62 = vpop.permute.xlu1 %1493 }
 0x5d5   : > { %3874 = vpow2.f32 %v1437_v61  ;;  %1513 = vst.msk [vmem:[#allocation2 + $0x61] sm:$0xff] %vm1018_vm0, %v1494_v62  ;;  %v3567_v63 = vpack.c.bf16 %v1494_v62, %v1492_v32 }
 0x5d7   : > { %3568 = vmatprep.subr.bf16.mxu0 %v3567_v63 }
 0x5d8   : > { %3570 = vmatpush3.bf16.msra.mxu0 %v3567_v63  ;;  %v1564_v63 = vld [vmem:[#allocation2 + $0x2] sm:$0xff] }
 0x5df   : > { %v3875_v0 = vpop.eup %3874 }
 0x5e0   : > { %v1459_v1 = vsel %vm1018_vm0, %v3875_v0, 0.0 }
 0x5e1   : > { %1460 = vadd.xlane.f32.xlu1 %v1459_v1 }
 0x5f2   : > { %1497 = vrot.lane.b32.xlu1 %v4816_v18, %s4303_s25  ;;  %v1920_v18 = vld [vmem:[#allocation14] sm:$0xff] }
 0x5f3   : > { %v3575_v16 = vpack.c.bf16 %v1921_v12, %v1920_v18  ;;  %v1565_v12 = vld [vmem:[#allocation2 + $0x12] sm:$0xff] }
 0x62c   : > { %v1446_v19 = vpop.xlane.xlu0 %1445 }
 0x62d   : > { %v1443_v2 = vpop.xlane.xlu1 %1442 }
 0x62e   : > { %3876 = vrcp.f32 %v1443_v2 }
 0x62f   : > { %3878 = vrcp.f32 %v1446_v19  ;;  %v1517_v19 = vld [vmem:[#allocation2 + $0x10] sm:$0xff] }
 0x631   : > { %v1452_v5 = vpop.xlane.xlu0 %1451 }
 0x635   : > { %v1449_v4 = vpop.xlane.xlu1 %1448 }
 0x636   : > { %3880 = vrcp.f32 %v1449_v4  ;;  %v4956_v4 = vld [vmem:[#allocation2 + $0x20] sm:$0xff] }
 0x637   : > { %3882 = vrcp.f32 %v1452_v5  ;;  %v1537_v5 = vld [vmem:[#allocation2 + $0x11] sm:$0xff] }
 0x638   : > { %v3877_v6 = vpop.eup %3876 }
 0x639   : > { %v1458_v7 = vpop.xlane.xlu0 %1457  ;;  %v1466_v8 = vmul.f32 %v3877_v6, %v3863_v28  ;;  %v1455_v13 = vpop.xlane.xlu1 %1454 }
 0x63a   : > { %3884 = vrcp.f32 %v1455_v13  ;;  %v3879_v3 = vpop.eup %3878  ;;  %v4958_v13 = vld [vmem:[#allocation2 + $0x21] sm:$0xff] }
 0x63b   : > { %3331 = vmatprep.mubr.msk.f32.mxu0 %vm1018_vm0, %v1466_v8  ;;  %3886 = vrcp.f32 %v1458_v7  ;;  %v1468_v22 = vmul.f32 %v3879_v3, %v4887_v27 }
 0x63d   : > { %v1464_v9 = vpop.xlane.xlu0 %1463 }
 0x640   : > { %v3881_v21 = vpop.eup %3880 }
 0x641   : > { %v1496_v10 = vpop.permute.xlu0 %1495  ;;  %v3883_v24 = vpop.eup %3882  ;;  %v1470_v25 = vmul.f32 %v3881_v21, %v4899_v49  ;;  %v1524_v49 = vlaneseq }
 0x642   : > { %1514 = vst.msk [vmem:[#allocation2 + $0x71] sm:$0xff] %vm1018_vm0, %v1496_v10  ;;  %v1472_v29 = vmul.f32 %v3883_v24, %v4893_v41 }
 0x643   : > { %v1525_v50 = vshrl.u32 %v1524_v49, 7 }
 0x644   : > { %v3885_v28 = vpop.eup %3884 }
 0x645   : > { %v3887_v32 = vpop.eup %3886  ;;  %v1474_v27 = vmul.f32 %v3885_v28, %v4903_v52  ;;  %v1526_v51 = vsub.s32 0, %v1525_v50  ;;  %v1546_v52 = vsub.s32 1, %v1525_v50  ;;  %v1574_v55 = vsub.s32 2, %v1525_v50 }
 0x646   : > { %v1476_v36 = vmul.f32 %v3887_v32, %v4906_v54  ;;  %v1602_v59 = vsub.s32 3, %v1525_v50  ;;  %v1630_v6 = vsub.s32 4, %v1525_v50  ;;  %v4978_v32 = vld [vmem:[#allocation2 + $0x41] sm:$0xff] }
 0x647   : > { %v4942_v54 = vrot.slane %v1481_v53, %v1526_v51  ;;  %v4944_v40 = vrot.slane %v1481_v53, %v1546_v52  ;;  %v4946_v58 = vrot.slane %v1481_v53, %v1574_v55 }
 0x648   : > { %v4960_v18 = vrot.slane %v1481_v53, %v1630_v6  ;;  %v5012_v6 = vld [vmem:[#allocation2 + $0x61] sm:$0xff] }
 0x649   : > { %v1548_v62 = vmul.f32 %v4944_v40, %v1536_v57  ;;  %v1576_v2 = vmul.f32 %v4946_v58, %v1564_v63  ;;  %v1530_v3 = vmul.f32 %v4956_v4, %v4942_v54  ;;  %v1550_v17 = vmul.f32 %v4958_v13, %v4944_v40 }
 0x64a   : > { %v1632_v24 = vmul.f32 %v4960_v18, %v1537_v5  ;;  %v1578_v49 = vmul.f32 %v4972_v26, %v4946_v58  ;;  %v1552_v51 = vmul.f32 %v4978_v32, %v4944_v40 }
 0x66e   : > { %v1461_v14 = vpop.xlane.xlu1 %1460 }
 0x66f   : > { %3888 = vrcp.f32 %v1461_v14  ;;  %v1658_v14 = vsub.s32 5, %v1525_v50 }
 0x670   : > { %3890 = vrcp.f32 %v1464_v9  ;;  %v1529_v9 = vmul.f32 %v4942_v54, %v1517_v19 }
 0x671   : > { %v4966_v21 = vrot.slane %v1481_v53, %v1658_v14 }
 0x672   : > { %v1498_v15 = vpop.permute.xlu1 %1497 }
 0x673   : > { %1515 = vst.msk [vmem:[#allocation2 + $0x81] sm:$0xff] %vm1018_vm0, %v1498_v15  ;;  %v3571_v60 = vpack.c.bf16 %v1498_v15, %v1496_v10  ;;  %v1549_v10 = vmul.f32 %v4944_v40, %v1537_v5  ;;  %v1678_v15 = vld [vmem:[#allocation2 + $0x30] sm:$0xff]  ;;  %v5010_v5 = vld [vmem:[#allocation2 + $0x60] sm:$0xff] }
 0x674   : > { %v1531_v28 = vmul.f32 %v1678_v15, %v4942_v54 }
 0x675   : > { %3572 = vmatprep.subr.bf16.mxu0 %v3571_v60  ;;  %v1557_v20 = vadd.f32 %v1549_v10, %v1529_v9 }
 0x676   : > { %3574 = vmatpush3.bf16.msra.mxu0 %v3571_v60  ;;  %v1706_v60 = vld [vmem:[#allocation2 + $0x31] sm:$0xff] }
 0x677   : > { %3576 = vmatprep.subr.bf16.mxu0 %v3575_v16 }
 0x679   : > { %3332 = vmatmul.mubr.msk.f32.vlgmr.msra.gmra.mrb[8].mxu0 %vm1018_vm0, %v1468_v22  ;;  %v3889_v33 = vpop.eup %3888  ;;  %v1687_v22 = vsub.s32 6, %v1525_v50 }
 0x67a   : > { %3334 = vmatprep.mubr.msk.f32.mxu0 %vm1018_vm0, %v1470_v25  ;;  %3578 = vmatpush3.bf16.msra.mxu0 %v3575_v16  ;;  %v3891_v37 = vpop.eup %3890  ;;  %v1478_v43 = vmul.f32 %v3889_v33, %v3875_v0  ;;  %v4950_v0 = vrot.slane %v1481_v53, %v1602_v59  ;;  %v1577_v25 = vmul.f32 %v4946_v58, %v1565_v12  ;;  %v4996_v59 = vld [vmem:[#allocation2 + $0x70] sm:$0xff] }
 0x67b   : > { %3580 = vmatprep.subr.bf16.mxu0 %v3579_v23  ;;  %v1480_v41 = vmul.f32 %v3891_v37, %v4912_v56  ;;  %v1516_v56 = vld [vmem:[#allocation2] sm:$0xff]  ;;  %v1558_v33 = vadd.f32 %v1550_v17, %v1530_v3  ;;  %v4980_v37 = vrot.slane %v1481_v53, %v1687_v22  ;;  %v5022_v3 = vld [vmem:[#allocation2 + $0x52] sm:$0xff]  ;;  %v1535_v17 = vmul.f32 %v4996_v59, %v4942_v54 }
 0x67c   : > { %v1528_v61 = vmul.f32 %v4942_v54, %v1516_v56  ;;  %v1604_v8 = vmul.f32 %v4950_v0, %v1517_v19  ;;  %v1605_v11 = vmul.f32 %v4950_v0, %v4956_v4  ;;  %v1606_v10 = vmul.f32 %v1678_v15, %v4950_v0 }
 0x67d   : > { %3335 = vmatmul.mubr.msk.f32.gmra.mrb[10].mxu0 %vm1018_vm0, %v1472_v29  ;;  %v1551_v29 = vmul.f32 %v1706_v60, %v4944_v40 }
 0x67e   : > { %3337 = vmatprep.mubr.msk.f32.mxu0 %vm1018_vm0, %v1474_v27  ;;  %3582 = vmatpush3.bf16.msra.mxu0 %v3579_v23  ;;  %v1556_v1 = vadd.f32 %v1548_v62, %v1528_v61  ;;  %v1715_v23 = vsub.s32 7, %v1525_v50  ;;  %v4998_v61 = vld [vmem:[#allocation2 + $0x71] sm:$0xff]  ;;  %v1633_v62 = vmul.f32 %v4960_v18, %v4958_v13 }
 0x67f   : > { %3584 = vmatprep.subr.bf16.mxu0 %v3583_v31  ;;  %v1559_v55 = vadd.f32 %v1551_v29, %v1531_v28 }
 0x680   : > { %v1584_v7 = vadd.f32 %v1576_v2, %v1556_v1  ;;  %v4983_v46 = vrot.slane %v1481_v53, %v1715_v23  ;;  %v1586_v53 = vadd.f32 %v1578_v49, %v1558_v33  ;;  %v5004_v1 = vld [vmem:[#allocation2 + $0x42] sm:$0xff]  ;;  %v1533_v2 = vmul.f32 %v4985_v47, %v4942_v54 }
 0x681   : > { %3338 = vmatmul.mubr.msk.f32.gmra.mrb[12].mxu0 %vm1018_vm0, %v1476_v36  ;;  %v1585_v36 = vadd.f32 %v1577_v25, %v1557_v20  ;;  %v1555_v20 = vmul.f32 %v4998_v61, %v4944_v40  ;;  %v1580_v23 = vmul.f32 %v5004_v1, %v4946_v58  ;;  %v1661_v25 = vmul.f32 %v4966_v21, %v4972_v26  ;;  %v1599_v49 = vld [vmem:[#allocation2 + $0x80] sm:$0xff] }
 0x682   : > { %3340 = vmatprep.mubr.msk.f32.mxu0 %vm1018_vm0, %v1478_v43  ;;  %3586 = vmatpush3.bf16.msra.mxu0 %v3583_v31  ;;  %v1612_v16 = vadd.f32 %v1604_v8, %v1584_v7  ;;  %v4976_v31 = vld [vmem:[#allocation2 + $0x40] sm:$0xff]  ;;  %v1734_v43 = vld [vmem:[#allocation2 + $0x32] sm:$0xff]  ;;  %v5017_v7 = vld [vmem:[%s5384_s7 + $0x8] ss:$0 sm:$0xff]  ;;  %v1690_v8 = vmul.f32 %v4980_v37, %v1678_v15  ;;  %v1718_v9 = vmul.f32 %v4983_v46, %v1706_v60 }
 0x683   : > { %3588 = vmatprep.subr.bf16.mxu0 %v3587_v48  ;;  %v1532_v50 = vmul.f32 %v4976_v31, %v4942_v54  ;;  %v1613_v52 = vadd.f32 %v1605_v11, %v1585_v36  ;;  %v1579_v57 = vmul.f32 %v1734_v43, %v4946_v58  ;;  %v1607_v63 = vmul.f32 %v4950_v0, %v4976_v31 }
 0x684   : > { %v1640_v27 = vadd.f32 %v1632_v24, %v1612_v16  ;;  %v1614_v22 = vadd.f32 %v1606_v10, %v1586_v53  ;;  %v1534_v24 = vmul.f32 %v5010_v5, %v4942_v54  ;;  %v1554_v15 = vmul.f32 %v5012_v6, %v4944_v40 }
 0x685   : > { %3341 = vmatmul.mubr.msk.f32.gmra.mrb[14].mxu0 %vm1018_vm0, %v1480_v41  ;;  %v1660_v41 = vmul.f32 %v4966_v21, %v1565_v12  ;;  %v1560_v14 = vadd.f32 %v1552_v51, %v1532_v50  ;;  %v1641_v12 = vadd.f32 %v1633_v62, %v1613_v52  ;;  %v1587_v16 = vadd.f32 %v1579_v57, %v1559_v55  ;;  %v5048_v52 = vld [vmem:[#allocation2 + $0x62] sm:$0xff] }
 0x686   : > { %3590 = vmatpush3.bf16.msra.mxu0 %v3587_v48  ;;  %v4987_v48 = vld [vmem:[#allocation2 + $0x51] sm:$0xff]  ;;  %v1746_v11 = vmul.f32 %v5017_v7, %v1734_v43  ;;  %v1634_v33 = vmul.f32 %v1706_v60, %v4960_v18  ;;  %v1581_v36 = vmul.f32 %v5022_v3, %v4946_v58  ;;  %v1635_v50 = vmul.f32 %v4960_v18, %v4978_v32 }
 0x687   : > { %v1668_v56 = vadd.f32 %v1660_v41, %v1640_v27  ;;  %v1553_v19 = vmul.f32 %v4987_v48, %v4944_v40  ;;  %v1615_v28 = vadd.f32 %v1607_v63, %v1587_v16  ;;  %v1689_v27 = vmul.f32 %v4980_v37, %v4956_v4  ;;  %v5042_v41 = vld [vmem:[#allocation2 + $0x72] sm:$0xff] }
 0x688   : > { %v1588_v54 = vadd.f32 %v1580_v23, %v1560_v14  ;;  %v1669_v40 = vadd.f32 %v1661_v25, %v1641_v12  ;;  %v1609_v51 = vmul.f32 %v4950_v0, %v5010_v5  ;;  %v1563_v55 = vadd.f32 %v1555_v20, %v1535_v17 }
 0x689   : > { %v1561_v29 = vadd.f32 %v1553_v19, %v1533_v2  ;;  %v1642_v4 = vadd.f32 %v1634_v33, %v1614_v22  ;;  %v1662_v60 = vmul.f32 %v1734_v43, %v4966_v21  ;;  %v1608_v57 = vmul.f32 %v4985_v47, %v4950_v0 }
 0x68a   : > { %v1562_v53 = vadd.f32 %v1554_v15, %v1534_v24  ;;  %v1643_v62 = vadd.f32 %v1635_v50, %v1615_v28  ;;  %v1583_v2 = vmul.f32 %v5042_v41, %v4946_v58  ;;  %v1611_v19 = vmul.f32 %v4950_v0, %v1599_v49  ;;  %v1627_v15 = vld [vmem:[#allocation2 + $0x81] sm:$0xff] }
 0x68b   : > { %v1589_v63 = vadd.f32 %v1581_v36, %v1561_v29  ;;  %v1697_v10 = vadd.f32 %v1689_v27, %v1668_v56  ;;  %v1616_v14 = vadd.f32 %v1608_v57, %v1588_v54  ;;  %v1582_v12 = vmul.f32 %v5048_v52, %v4946_v58 }
 0x68c   : > { %v1610_v16 = vmul.f32 %v4996_v59, %v4950_v0  ;;  %v1698_v43 = vadd.f32 %v1690_v8, %v1669_v40  ;;  %v1663_v17 = vmul.f32 %v4966_v21, %v5004_v1  ;;  %v1591_v22 = vadd.f32 %v1583_v2, %v1563_v55 }
 0x68d   : > { %v1617_v20 = vadd.f32 %v1609_v51, %v1589_v63  ;;  %v1692_v23 = vmul.f32 %v4980_v37, %v4985_v47  ;;  %v1670_v24 = vadd.f32 %v1662_v60, %v1642_v4  ;;  %v1636_v56 = vmul.f32 %v4987_v48, %v4960_v18  ;;  %v1655_v4 = vld [vmem:[#allocation2 + $0x82] sm:$0xff] }
 0x68e   : > { %v1590_v25 = vadd.f32 %v1582_v12, %v1562_v53  ;;  %v1717_v58 = vmul.f32 %v4983_v46, %v4958_v13  ;;  %v1671_v28 = vadd.f32 %v1663_v17, %v1643_v62  ;;  %v1637_v0 = vmul.f32 %v4960_v18, %v5012_v6  ;;  %v3006_v12 = vld [vmem:[#allocation11] ss:$0 sm:$0xff] }
 0x68f   : > { %v1619_v8 = vadd.f32 %v1611_v19, %v1591_v22  ;;  %v1691_v29 = vmul.f32 %v4980_v37, %v4976_v31  ;;  %v1644_v27 = vadd.f32 %v1636_v56, %v1616_v14  ;;  %v1664_v47 = vmul.f32 %v5022_v3, %v4966_v21 }
 0x690   : > { %v1618_v33 = vadd.f32 %v1610_v16, %v1590_v25  ;;  %v1726_v36 = vadd.f32 %v1718_v9, %v1698_v43  ;;  %v1725_v54 = vadd.f32 %v1717_v58, %v1697_v10  ;;  %v1645_v40 = vadd.f32 %v1637_v0, %v1617_v20 }
 0x691   : > { %v1639_v50 = vmul.f32 %v4960_v18, %v1627_v15  ;;  %v1745_v13 = vmul.f32 %v5017_v7, %v4972_v26  ;;  %v1699_v51 = vadd.f32 %v1691_v29, %v1670_v24  ;;  %v1693_v55 = vmul.f32 %v4980_v37, %v5010_v5  ;;  %v1684_v5 = vld [vmem:[#allocation2 + $0x90] sm:$0xff] }
 0x692   : > { %v1638_v31 = vmul.f32 %v4998_v61, %v4960_v18  ;;  %v1700_v60 = vadd.f32 %v1692_v23, %v1671_v28  ;;  %v1665_v57 = vmul.f32 %v4966_v21, %v5048_v52  ;;  %v1694_v9 = vmul.f32 %v4980_v37, %v4996_v59  ;;  %v1712_v24 = vld [vmem:[#allocation2 + $0x91] sm:$0xff]  ;;  %v3007_v28 = vld [vmem:[#allocation12] ss:$0 sm:$0xff] }
 0x693   : > { %v1647_v53 = vadd.f32 %v1639_v50, %v1619_v8  ;;  %v1720_v62 = vmul.f32 %v4983_v46, %v4987_v48  ;;  %v1719_v26 = vmul.f32 %v4983_v46, %v4978_v32  ;;  %v1672_v63 = vadd.f32 %v1664_v47, %v1644_v27 }
 0x694   : > { %v1646_v2 = vadd.f32 %v1638_v31, %v1618_v33  ;;  %v1754_v19 = vadd.f32 %v1746_v11, %v1726_v36  ;;  %v1753_v10 = vadd.f32 %v1745_v13, %v1725_v54  ;;  %v1673_v18 = vadd.f32 %v1665_v57, %v1645_v40  ;;  %v1740_v33 = vld [vmem:[#allocation2 + $0x92] sm:$0xff] }
 0x695   : > { %v1667_v14 = vmul.f32 %v4966_v21, %v1655_v4  ;;  %v1727_v16 = vadd.f32 %v1719_v26, %v1699_v51  ;;  %v1701_v43 = vadd.f32 %v1693_v55, %v1672_v63  ;;  %v1666_v59 = vmul.f32 %v5042_v41, %v4966_v21 }
 0x696   : > { %v1695_v17 = vmul.f32 %v4980_v37, %v1599_v49  ;;  %v1728_v48 = vadd.f32 %v1720_v62, %v1700_v60  ;;  %v1702_v20 = vadd.f32 %v1694_v9, %v1673_v18  ;;  %v1696_v32 = vmul.f32 %v4980_v37, %v1684_v5 }
 0x697   : > { %v1675_v22 = vadd.f32 %v1667_v14, %v1647_v53  ;;  %v1747_v11 = vmul.f32 %v5017_v7, %v5004_v1  ;;  %v1721_v23 = vmul.f32 %v4983_v46, %v5012_v6  ;;  %v1674_v56 = vadd.f32 %v1666_v59, %v1646_v2 }
 0x698   : > { %v1768_v25 = vmul.f32 %v3006_v12, %v1753_v10  ;;  %v1748_v58 = vmul.f32 %v5017_v7, %v5022_v3  ;;  %v1722_v21 = vmul.f32 %v4983_v46, %v4998_v61  ;;  %v1769_v49 = vmul.f32 %v3006_v12, %v1754_v19 }
 0x699   : > { %v1755_v0 = vadd.f32 %v1747_v11, %v1727_v16  ;;  %v1729_v8 = vadd.f32 %v1721_v23, %v1701_v43  ;;  %v1703_v37 = vadd.f32 %v1695_v17, %v1674_v56  ;;  %v1704_v1 = vadd.f32 %v1696_v32, %v1675_v22  ;;  %v3024_v56 = vld [vmem:[#allocation15] ss:$0 sm:$0xff] }
 0x69a   : > { %v1756_v29 = vadd.f32 %v1748_v58, %v1728_v48  ;;  %v1730_v27 = vadd.f32 %v1722_v21, %v1702_v20  ;;  %v1724_v47 = vmul.f32 %v4983_v46, %v1712_v24  ;;  %v1749_v6 = vmul.f32 %v5017_v7, %v5048_v52 }
 0x69b   : > { %v1723_v36 = vmul.f32 %v4983_v46, %v1627_v15  ;;  %v1783_v3 = vadd.f32 %v3007_v28, %v1768_v25  ;;  %v1750_v61 = vmul.f32 %v5017_v7, %v5042_v41  ;;  %v1784_v54 = vadd.f32 %v3007_v28, %v1769_v49 }
 0x69c   : > { %v1770_v50 = vmul.f32 %v3006_v12, %v1755_v0  ;;  %v1757_v13 = vadd.f32 %v1749_v6, %v1729_v8  ;;  %v1771_v31 = vmul.f32 %v3006_v12, %v1756_v29  ;;  %v1732_v57 = vadd.f32 %v1724_v47, %v1704_v1  ;;  %v2127_v47 = vld [vmem:[#allocation17] sm:$0xff]  ;;  %v2128_v6 = vld [vmem:[#allocation17 + $0x8] sm:$0xff] }
 0x69d   : > { %v1731_v51 = vadd.f32 %v1723_v36, %v1703_v37  ;;  %v1758_v60 = vadd.f32 %v1750_v61, %v1730_v27  ;;  %v1752_v9 = vmul.f32 %v5017_v7, %v1740_v33  ;;  %v1751_v52 = vmul.f32 %v5017_v7, %v1655_v4  ;;  %v2129_v33 = vld [vmem:[#allocation17 + $0x10] sm:$0xff] }
 0x69e   : > { %v1785_v15 = vadd.f32 %v3007_v28, %v1770_v50  ;;  %v1772_v41 = vmul.f32 %v3006_v12, %v1757_v13  ;;  %v1786_v63 = vadd.f32 %v3007_v28, %v1771_v31  ;;  %v3591_v61 = vpack.c.bf16 %v2128_v6, %v2127_v47  ;;  %v2371_v47 = vld [vmem:[%s5393_s16 + $0x28] sm:$0xff] }
 0x69f   : > { %v1759_v26 = vadd.f32 %v1751_v52, %v1731_v51  ;;  %v1773_v2 = vmul.f32 %v3006_v12, %v1758_v60  ;;  %v1760_v19 = vadd.f32 %v1752_v9, %v1732_v57  ;;  %v2131_v51 = vld [vmem:[#allocation17 + $0x20] sm:$0xff] }
 0x6a0   : > { %v1787_v16 = vadd.f32 %v3007_v28, %v1772_v41  ;;  %3592 = vmatprep.subr.bf16.mxu1 %v3591_v61 }
 0x6a1   : > { %v1774_v7 = vmul.f32 %v3006_v12, %v1759_v26  ;;  %v1788_v4 = vadd.f32 %v3007_v28, %v1773_v2  ;;  %v1775_v59 = vmul.f32 %v3006_v12, %v1760_v19  ;;  %v3025_v12 = vld [vmem:[%s5389_s12] ss:$0 sm:$0xff]  ;;  %3594 = vmatpush3.bf16.msra.mxu1 %v3591_v61 }
 0x6a2   : > { %v2374_v61 = vld [vmem:[%s5393_s16 + $0x40] sm:$0xff] }
 0x6a3   : > { %v1789_v22 = vadd.f32 %v3007_v28, %v1774_v7  ;;  %v1790_v32 = vadd.f32 %v3007_v28, %v1775_v59 }
 0x74c   : > { %v3333_v40 = vpop.f32.mrb[8].mxu0 }
 0x74d   : > { %v1881_v55 = vpop.f32.mrb[9].mxu0  ;;  %v1887_v62 = vadd.f32 %v3333_v40, %v1784_v54  ;;  %v2130_v54 = vld [vmem:[#allocation17 + $0x18] sm:$0xff] }
 0x74e   : > { %v1882_v53 = vadd.f32 %v1881_v55, %v1783_v3  ;;  %v3595_v13 = vpack.c.bf16 %v2130_v54, %v2129_v33  ;;  %v2132_v55 = vld [vmem:[#allocation17 + $0x28] sm:$0xff]  ;;  %v2375_v54 = vld [vmem:[%s5393_s16 + $0x48] sm:$0xff] }
 0x74f   : > { %v2372_v33 = vld [vmem:[%s5393_s16 + $0x30] sm:$0xff] }
 0x750   : > { %v3336_v46 = vpop.f32.mrb[10].mxu0  ;;  %3359 = vmatprep.mubr.msk.f32.mxu0 %vm1018_vm0, %v1882_v53  ;;  %3596 = vmatprep.subr.bf16.mxu1 %v3595_v13  ;;  %v3599_v53 = vpack.c.bf16 %v2132_v55, %v2131_v51  ;;  %v2378_v55 = vld [vmem:[%s5393_s16 + $0x60] sm:$0xff] }
 0x751   : > { %v1891_v5 = vpop.f32.mrb[11].mxu0  ;;  %3360 = vmatmul.mubr.msk.f32.vlgmr.msra.gmra.mrb[16].mxu0 %vm1018_vm0, %v1887_v62  ;;  %v1897_v18 = vadd.f32 %v3336_v46, %v1786_v63  ;;  %v2133_v46 = vld [vmem:[#allocation17 + $0x30] sm:$0xff]  ;;  %3598 = vmatpush3.bf16.msra.mxu1 %v3595_v13 }
 0x752   : > { %v1892_v10 = vadd.f32 %v1891_v5, %v1785_v15  ;;  %v2134_v15 = vld [vmem:[#allocation17 + $0x38] sm:$0xff]  ;;  %3600 = vmatprep.subr.bf16.mxu1 %v3599_v53  ;;  %v2377_v13 = vld [vmem:[%s5393_s16 + $0x58] sm:$0xff] }
 0x753   : > { %v3603_v5 = vpack.c.bf16 %v2134_v15, %v2133_v46  ;;  %v3035_v46 = vld [vmem:[%s5392_s15] ss:$0 sm:$0xff] }
 0x754   : > { %v3339_v14 = vpop.f32.mrb[12].mxu0  ;;  %3362 = vmatprep.mubr.msk.f32.mxu0 %vm1018_vm0, %v1892_v10 }
 0x755   : > { %v1901_v43 = vpop.f32.mrb[13].mxu0  ;;  %3363 = vmatmul.mubr.msk.f32.gmra.mrb[18].mxu0 %vm1018_vm0, %v1897_v18  ;;  %v1907_v48 = vadd.f32 %v3339_v14, %v1788_v4  ;;  %3602 = vmatpush3.bf16.msra.mxu1 %v3599_v53 }
 0x756   : > { %v1902_v17 = vadd.f32 %v1901_v43, %v1787_v16  ;;  %3604 = vmatprep.subr.bf16.mxu1 %v3603_v5 }
 0x758   : > { %v3342_v20 = vpop.f32.mrb[14].mxu0  ;;  %3365 = vmatprep.mubr.msk.f32.mxu0 %vm1018_vm0, %v1902_v17 }
 0x759   : > { %v1911_v11 = vpop.f32.mrb[15].mxu0  ;;  %3366 = vmatmul.mubr.msk.f32.gmra.mrb[20].mxu0 %vm1018_vm0, %v1907_v48  ;;  %v1917_v24 = vadd.f32 %v3342_v20, %v1790_v32  ;;  %3606 = vmatpush3.bf16.msra.mxu1 %v3603_v5 }
 0x75a   : > { %v1912_v23 = vadd.f32 %v1911_v11, %v1789_v22 }
 0x75c   : > { %3368 = vmatprep.mubr.msk.f32.mxu0 %vm1018_vm0, %v1912_v23 }
 0x75d   : > { %3369 = vmatmul.mubr.msk.f32.gmra.mrb[22].mxu0 %vm1018_vm0, %v1917_v24 }
 0x824   : > { %v3361_v25 = vpop.f32.mrb[16].mxu0 }
 0x825   : > { %v2065_v58 = vmul.f32 %v3361_v25, %v3024_v56  ;;  %v2018_v21 = vpop.f32.mrb[17].mxu0 }
 0x826   : > { %v2064_v49 = vmul.f32 %v3024_v56, %v2018_v21 }
 0x827   : > { %v2080_v0 = vadd.f32 %v3025_v12, %v2065_v58 }
 0x828   : > { %v2079_v28 = vadd.f32 %v3025_v12, %v2064_v49  ;;  %v3364_v8 = vpop.f32.mrb[18].mxu0 }
 0x829   : > { %v2067_v37 = vmul.f32 %v3364_v8, %v3024_v56  ;;  %2097 = vrot.lane.b32.xlu1 %v2080_v0, %s4303_s25  ;;  %v2028_v29 = vpop.f32.mrb[19].mxu0  ;;  %v2366_v0 = vld [vmem:[%s5393_s16] sm:$0xff] }
 0x82a   : > { %v2066_v27 = vmul.f32 %v3024_v56, %v2028_v29  ;;  %2095 = vrot.lane.b32.xlu0 %v2079_v28, %s4303_s25  ;;  %v2367_v28 = vld [vmem:[%s5393_s16 + $0x8] sm:$0xff]  ;;  %v2369_v29 = vld [vmem:[%s5393_s16 + $0x18] sm:$0xff] }
 0x82b   : > { %v2082_v1 = vadd.f32 %v3025_v12, %v2067_v37  ;;  %v3607_v8 = vpack.c.bf16 %v2367_v28, %v2366_v0  ;;  %v2368_v37 = vld [vmem:[%s5393_s16 + $0x10] sm:$0xff] }
 0x82c   : > { %v2081_v36 = vadd.f32 %v3025_v12, %v2066_v27  ;;  %v3367_v3 = vpop.f32.mrb[20].mxu0  ;;  %v3611_v27 = vpack.c.bf16 %v2369_v29, %v2368_v37 }
 0x82d   : > { %v2069_v40 = vmul.f32 %v3367_v3, %v3024_v56  ;;  %2101 = vrot.lane.b32.xlu1 %v2082_v1, %s4303_s25  ;;  %v2038_v50 = vpop.f32.mrb[21].mxu0  ;;  %3608 = vmatprep.subr.bf16.mxu0 %v3607_v8  ;;  %v2370_v1 = vld [vmem:[%s5393_s16 + $0x20] sm:$0xff] }
 0x82e   : > { %v2068_v31 = vmul.f32 %v3024_v56, %v2038_v50  ;;  %2099 = vrot.lane.b32.xlu0 %v2081_v36, %s4303_s25  ;;  %3610 = vmatpush3.bf16.msra.mxu0 %v3607_v8  ;;  %v3615_v6 = vpack.c.bf16 %v2371_v47, %v2370_v1  ;;  %v2373_v36 = vld [vmem:[%s5393_s16 + $0x38] sm:$0xff]  ;;  %v2376_v50 = vld [vmem:[%s5393_s16 + $0x50] sm:$0xff] }
 0x82f   : > { %v2084_v60 = vadd.f32 %v3025_v12, %v2069_v40  ;;  %3612 = vmatprep.subr.bf16.mxu0 %v3611_v27  ;;  %v3619_v3 = vpack.c.bf16 %v2373_v36, %v2372_v33  ;;  %v3623_v40 = vpack.c.bf16 %v2375_v54, %v2374_v61  ;;  %v3627_v51 = vpack.c.bf16 %v2377_v13, %v2376_v50 }
 0x830   : > { %v2083_v57 = vadd.f32 %v3025_v12, %v2068_v31  ;;  %v3370_v9 = vpop.f32.mrb[22].mxu0  ;;  %v2379_v31 = vld [vmem:[%s5393_s16 + $0x68] sm:$0xff] }
 0x831   : > { %v2071_v52 = vmul.f32 %v3370_v9, %v3024_v56  ;;  %2105 = vrot.lane.b32.xlu1 %v2084_v60, %s4303_s25  ;;  %v2048_v62 = vpop.f32.mrb[23].mxu0  ;;  %v3631_v60 = vpack.c.bf16 %v2379_v31, %v2378_v55  ;;  %v2381_v9 = vld [vmem:[%s5393_s16 + $0x78] sm:$0xff] }
 0x832   : > { %v2070_v41 = vmul.f32 %v3024_v56, %v2048_v62  ;;  %2103 = vrot.lane.b32.xlu0 %v2083_v57, %s4303_s25  ;;  %3614 = vmatpush3.bf16.msra.mxu0 %v3611_v27  ;;  %v2380_v57 = vld [vmem:[%s5393_s16 + $0x70] sm:$0xff] }
 0x833   : > { %v2086_v26 = vadd.f32 %v3025_v12, %v2071_v52  ;;  %3616 = vmatprep.subr.bf16.mxu0 %v3615_v6  ;;  %v3635_v53 = vpack.c.bf16 %v2381_v9, %v2380_v57  ;;  %v3034_v52 = vld [vmem:[%s5391_s14] ss:$0 sm:$0xff] }
 0x834   : > { %v2085_v63 = vadd.f32 %v3025_v12, %v2070_v41 }
 0x835   : > { %2109 = vrot.lane.b32.xlu1 %v2086_v26, %s4303_s25 }
 0x836   : > { %2107 = vrot.lane.b32.xlu0 %v2085_v63, %s4303_s25  ;;  %3618 = vmatpush3.bf16.msra.mxu0 %v3615_v6 }
 0x837   : > { %3620 = vmatprep.subr.bf16.mxu0 %v3619_v3 }
 0x83a   : > { %3622 = vmatpush3.bf16.msra.mxu0 %v3619_v3 }
 0x83b   : > { %3624 = vmatprep.subr.bf16.mxu0 %v3623_v40 }
 0x83e   : > { %3626 = vmatpush3.bf16.msra.mxu0 %v3623_v40 }
 0x83f   : > { %3628 = vmatprep.subr.bf16.mxu0 %v3627_v51 }
 0x842   : > { %3630 = vmatpush3.bf16.msra.mxu0 %v3627_v51 }
 0x843   : > { %3632 = vmatprep.subr.bf16.mxu0 %v3631_v60 }
 0x846   : > { %3634 = vmatpush3.bf16.msra.mxu0 %v3631_v60 }
 0x847   : > { %3636 = vmatprep.subr.bf16.mxu0 %v3635_v53 }
 0x84a   : > { %3638 = vmatpush3.bf16.msra.mxu0 %v3635_v53 }
 0x89b   : > { %v2098_v2 = vpop.permute.xlu1 %2097 }
 0x89c   : > { %v5130_v19 = vadd.f32 %v2098_v2, %v4740_v34  ;;  %v2096_v10 = vpop.permute.xlu0 %2095 }
 0x89d   : > { %v5133_v18 = vadd.f32 %v2096_v10, %v4735_v30 }
 0x89e   : > { %2145 = vrot.lane.b32.xlu1 %v5130_v19, %s4303_s25 }
 0x89f   : > { %v2102_v14 = vpop.permute.xlu1 %2101  ;;  %2143 = vrot.lane.b32.xlu0 %v5133_v18, %s4303_s25 }
 0x8a0   : > { %v5140_v16 = vadd.f32 %v2102_v14, %v4749_v38  ;;  %v2100_v7 = vpop.permute.xlu0 %2099 }
 0x8a1   : > { %v5143_v4 = vadd.f32 %v2100_v7, %v4742_v35 }
 0x8a2   : > { %2149 = vrot.lane.b32.xlu1 %v5140_v16, %s4303_s25 }
 0x8a3   : > { %v2106_v43 = vpop.permute.xlu1 %2105  ;;  %2147 = vrot.lane.b32.xlu0 %v5143_v4, %s4303_s25 }
 0x8a4   : > { %v5150_v59 = vadd.f32 %v2106_v43, %v4758_v42  ;;  %v2104_v17 = vpop.permute.xlu0 %2103 }
 0x8a5   : > { %v5153_v48 = vadd.f32 %v2104_v17, %v4751_v39 }
 0x8a6   : > { %2153 = vrot.lane.b32.xlu1 %v5150_v59, %s4303_s25 }
 0x8a7   : > { %v2110_v20 = vpop.permute.xlu1 %2109  ;;  %2151 = vrot.lane.b32.xlu0 %v5153_v48, %s4303_s25 }
 0x8a8   : > { %v5160_v22 = vadd.f32 %v2110_v20, %v4766_v45  ;;  %v2108_v32 = vpop.permute.xlu0 %2107 }
 0x8a9   : > { %v5163_v11 = vadd.f32 %v2108_v32, %v4762_v44 }
 0x8aa   : > { %2157 = vrot.lane.b32.xlu1 %v5160_v22, %s4303_s25 }
 0x8ab   : > { %2155 = vrot.lane.b32.xlu0 %v5163_v11, %s4303_s25 }
 0x910   : > { %v2146_v23 = vpop.permute.xlu1 %2145 }
 0x911   : > { %v2144_v24 = vpop.permute.xlu0 %2143 }
 0x912   : > { %3387 = vmatprep.mubr.msk.f32.mxu1 %vm1018_vm0, %v2144_v24 }
 0x913   : > { %3388 = vmatmul.mubr.msk.f32.vlgmr.msra.gmra.mrb[16].mxu1 %vm1018_vm0, %v2146_v23 }
 0x914   : > { %v2150_v56 = vpop.permute.xlu1 %2149 }
 0x915   : > { %v2148_v25 = vpop.permute.xlu0 %2147 }
 0x916   : > { %3390 = vmatprep.mubr.msk.f32.mxu1 %vm1018_vm0, %v2148_v25 }
 0x917   : > { %3391 = vmatmul.mubr.msk.f32.gmra.mrb[18].mxu1 %vm1018_vm0, %v2150_v56 }
 0x918   : > { %v2154_v12 = vpop.permute.xlu1 %2153 }
 0x919   : > { %v2152_v58 = vpop.permute.xlu0 %2151 }
 0x91a   : > { %3393 = vmatprep.mubr.msk.f32.mxu1 %vm1018_vm0, %v2152_v58 }
 0x91b   : > { %3394 = vmatmul.mubr.msk.f32.gmra.mrb[20].mxu1 %vm1018_vm0, %v2154_v12 }
 0x91c   : > { %v2158_v49 = vpop.permute.xlu1 %2157 }
 0x91d   : > { %v2156_v21 = vpop.permute.xlu0 %2155 }
 0x91e   : > { %3396 = vmatprep.mubr.msk.f32.mxu1 %vm1018_vm0, %v2156_v21 }
 0x91f   : > { %3397 = vmatmul.mubr.msk.f32.gmra.mrb[22].mxu1 %vm1018_vm0, %v2158_v49 }
 0x9e6   : > { %v3389_v62 = vpop.f32.mrb[16].mxu1 }
 0x9e7   : > { %v2288_v15 = vmul.f32 %v3389_v62, %v3034_v52  ;;  %v2241_v41 = vpop.f32.mrb[17].mxu1 }
 0x9e8   : > { %v2287_v26 = vmul.f32 %v3034_v52, %v2241_v41 }
 0x9e9   : > { %v2303_v63 = vadd.f32 %v3035_v46, %v2288_v15 }
 0x9ea   : > { %v2302_v5 = vadd.f32 %v3035_v46, %v2287_v26  ;;  %v3392_v2 = vpop.f32.mrb[18].mxu1 }
 0x9eb   : > { %v3037_v10 = vmul.f32 -1.442695, %v2303_v63  ;;  %v2290_v14 = vmul.f32 %v3392_v2, %v3034_v52  ;;  %v2251_v7 = vpop.f32.mrb[19].mxu1 }
 0x9ec   : > { %v3036_v43 = vmul.f32 -1.442695, %v2302_v5  ;;  %v2289_v17 = vmul.f32 %v3034_v52, %v2251_v7 }
 0x9ed   : > { %3892 = vpow2.f32 %v3037_v10  ;;  %v2305_v20 = vadd.f32 %v3035_v46, %v2290_v14 }
 0x9ee   : > { %3894 = vpow2.f32 %v3036_v43  ;;  %v2304_v32 = vadd.f32 %v3035_v46, %v2289_v17  ;;  %v3395_v23 = vpop.f32.mrb[20].mxu1 }
 0x9ef   : > { %v3039_v24 = vmul.f32 -1.442695, %v2305_v20  ;;  %v2292_v56 = vmul.f32 %v3395_v23, %v3034_v52  ;;  %v2261_v25 = vpop.f32.mrb[21].mxu1 }
 0x9f0   : > { %v3038_v12 = vmul.f32 -1.442695, %v2304_v32  ;;  %v2291_v58 = vmul.f32 %v3034_v52, %v2261_v25 }
 0x9f1   : > { %3896 = vpow2.f32 %v3039_v24  ;;  %v2307_v21 = vadd.f32 %v3035_v46, %v2292_v56 }
 0x9f2   : > { %3898 = vpow2.f32 %v3038_v12  ;;  %v2306_v49 = vadd.f32 %v3035_v46, %v2291_v58  ;;  %v3398_v0 = vpop.f32.mrb[22].mxu1  ;;  %v2565_v12 = vld [vmem:[%s5396_s19] sm:$0xff] }
 0x9f3   : > { %v3041_v28 = vmul.f32 -1.442695, %v2307_v21  ;;  %v2294_v8 = vmul.f32 %v3398_v0, %v3034_v52  ;;  %v2271_v37 = vpop.f32.mrb[23].mxu1  ;;  %v2569_v0 = vld [vmem:[%s5396_s19 + $0x20] sm:$0xff] }
 0x9f4   : > { %v3040_v29 = vmul.f32 -1.442695, %v2306_v49  ;;  %v2293_v27 = vmul.f32 %v3034_v52, %v2271_v37  ;;  %v2571_v37 = vld [vmem:[%s5396_s19 + $0x30] sm:$0xff] }
 0x9f5   : > { %3900 = vpow2.f32 %v3041_v28  ;;  %v2309_v1 = vadd.f32 %v3035_v46, %v2294_v8  ;;  %v2570_v28 = vld [vmem:[%s5396_s19 + $0x28] sm:$0xff] }
 0x9f6   : > { %3902 = vpow2.f32 %v3040_v29  ;;  %v2308_v47 = vadd.f32 %v3035_v46, %v2293_v27  ;;  %v3647_v8 = vpack.c.bf16 %v2570_v28, %v2569_v0  ;;  %v2572_v29 = vld [vmem:[%s5396_s19 + $0x38] sm:$0xff] }
 0x9f7   : > { %v3893_v6 = vpop.eup %3892  ;;  %v3043_v33 = vmul.f32 -1.442695, %v2309_v1  ;;  %v3651_v27 = vpack.c.bf16 %v2572_v29, %v2571_v37 }
 0x9f8   : > { %v3895_v36 = vpop.eup %3894  ;;  %v2335_v3 = vadd.f32 1.0, %v3893_v6  ;;  %v3042_v61 = vmul.f32 -1.442695, %v2308_v47 }
 0x9f9   : > { %v2334_v54 = vadd.f32 1.0, %v3895_v36  ;;  %3904 = vpow2.f32 %v3043_v33  ;;  %v2575_v33 = vld [vmem:[%s5396_s19 + $0x50] sm:$0xff]  ;;  %v2576_v36 = vld [vmem:[%s5396_s19 + $0x58] sm:$0xff] }
 0x9fa   : > { %3906 = vrcp.f32 %v2335_v3  ;;  %v3659_v3 = vpack.c.bf16 %v2576_v36, %v2575_v33 }
 0x9fb   : > { %v3897_v40 = vpop.eup %3896  ;;  %3908 = vrcp.f32 %v2334_v54  ;;  %v2578_v54 = vld [vmem:[%s5396_s19 + $0x68] sm:$0xff] }
 0x9fc   : > { %v3899_v50 = vpop.eup %3898  ;;  %v2337_v13 = vadd.f32 1.0, %v3897_v40  ;;  %3910 = vpow2.f32 %v3042_v61  ;;  %v2577_v61 = vld [vmem:[%s5396_s19 + $0x60] sm:$0xff] }
 0x9fd   : > { %v2336_v51 = vadd.f32 1.0, %v3899_v50  ;;  %v3663_v40 = vpack.c.bf16 %v2578_v54, %v2577_v61  ;;  %v2579_v50 = vld [vmem:[%s5396_s19 + $0x70] sm:$0xff] }
 0x9fe   : > { %3912 = vrcp.f32 %v2337_v13  ;;  %v2580_v13 = vld [vmem:[%s5396_s19 + $0x78] sm:$0xff] }
 0x9ff   : > { %v3901_v55 = vpop.eup %3900  ;;  %3914 = vrcp.f32 %v2336_v51  ;;  %v3667_v51 = vpack.c.bf16 %v2580_v13, %v2579_v50 }
 0xa00   : > { %v3903_v31 = vpop.eup %3902  ;;  %v2339_v60 = vadd.f32 1.0, %v3901_v55  ;;  %v3044_v55 = vld [vmem:[%s5473_s6] ss:$0 sm:$0xff] }
 0xa01   : > { %v2338_v57 = vadd.f32 1.0, %v3903_v31 }
 0xa02   : > { %3916 = vrcp.f32 %v2339_v60  ;;  %v3045_v60 = vld [vmem:[%s5474_s11] ss:$0 sm:$0xff]  ;;  %s5336_s11 = scalar_lea.sflag [#allocation5], %s795_s23 }
 0xa03   : > { %v3905_v9 = vpop.eup %3904  ;;  %3918 = vrcp.f32 %v2338_v57 }
 0xa04   : > { %v3907_v53 = vpop.eup %3906  ;;  %v2341_v52 = vadd.f32 1.0, %v3905_v9 }
 0xa05   : > { %v3909_v62 = vpop.eup %3908  ;;  %v2359_v41 = vmul.f32 %v3907_v53, %v2303_v63 }
 0xa06   : > { %v3911_v46 = vpop.eup %3910  ;;  %v2358_v15 = vmul.f32 %v3909_v62, %v2302_v5  ;;  %3920 = vrcp.f32 %v2341_v52 }
 0xa07   : > { %v2340_v26 = vadd.f32 1.0, %v3911_v46 }
 0xa08   : > { %v3913_v2 = vpop.eup %3912  ;;  %3431 = vmatprep.mubr.f32.mxu0 %v2358_v15 }
 0xa09   : > { %v3915_v10 = vpop.eup %3914  ;;  %3922 = vrcp.f32 %v2340_v26  ;;  %3432 = vmatmul.mubr.f32.vlgmr.msra.gmra.mrb[24].mxu0 %v2359_v41  ;;  %v2361_v7 = vmul.f32 %v3913_v2, %v2305_v20  ;;  %v2566_v20 = vld [vmem:[%s5396_s19 + $0x8] sm:$0xff] }
 0xa0a   : > { %v2360_v14 = vmul.f32 %v3915_v10, %v2304_v32  ;;  %v2567_v32 = vld [vmem:[%s5396_s19 + $0x10] sm:$0xff]  ;;  %v3639_v58 = vpack.c.bf16 %v2566_v20, %v2565_v12 }
 0xa0c   : > { %v3917_v43 = vpop.eup %3916  ;;  %3434 = vmatprep.mubr.f32.mxu0 %v2360_v14  ;;  %3640 = vmatprep.subr.bf16.mxu1 %v3639_v58 }
 0xa0d   : > { %v3919_v17 = vpop.eup %3918  ;;  %3435 = vmatmul.mubr.f32.gmra.mrb[26].mxu0 %v2361_v7  ;;  %v2363_v24 = vmul.f32 %v3917_v43, %v2307_v21  ;;  %v2568_v21 = vld [vmem:[%s5396_s19 + $0x18] sm:$0xff]  ;;  %3642 = vmatpush3.bf16.msra.mxu1 %v3639_v58 }
 0xa0e   : > { %v2362_v23 = vmul.f32 %v3919_v17, %v2306_v49  ;;  %v3643_v49 = vpack.c.bf16 %v2568_v21, %v2567_v32 }
 0xa10   : > { %3437 = vmatprep.mubr.f32.mxu0 %v2362_v23  ;;  %v3921_v56 = vpop.eup %3920  ;;  %3644 = vmatprep.subr.bf16.mxu1 %v3643_v49 }
 0xa11   : > { %3438 = vmatmul.mubr.f32.gmra.mrb[28].mxu0 %v2363_v24  ;;  %v2365_v25 = vmul.f32 %v3921_v56, %v2309_v1  ;;  %3646 = vmatpush3.bf16.msra.mxu1 %v3643_v49  ;;  %v2573_v1 = vld [vmem:[%s5396_s19 + $0x40] sm:$0xff] }
 0xa12   : > { %3648 = vmatprep.subr.bf16.mxu1 %v3647_v8 }
 0xa13   : > { %v3923_v5 = vpop.eup %3922 }
 0xa14   : > { %v2364_v63 = vmul.f32 %v3923_v5, %v2308_v47  ;;  %v2574_v47 = vld [vmem:[%s5396_s19 + $0x48] sm:$0xff] }
 0xa15   : > { %3650 = vmatpush3.bf16.msra.mxu1 %v3647_v8  ;;  %v3655_v6 = vpack.c.bf16 %v2574_v47, %v2573_v1 }
 0xa16   : > { %3440 = vmatprep.mubr.f32.mxu0 %v2364_v63  ;;  %3652 = vmatprep.subr.bf16.mxu1 %v3651_v27 }
 0xa17   : > { %3441 = vmatmul.mubr.f32.gmra.mrb[30].mxu0 %v2365_v25 }
 0xa19   : > { %3654 = vmatpush3.bf16.msra.mxu1 %v3651_v27 }
 0xa1a   : > { %3656 = vmatprep.subr.bf16.mxu1 %v3655_v6 }
 0xa1d   : > { %3658 = vmatpush3.bf16.msra.mxu1 %v3655_v6 }
 0xa1e   : > { %3660 = vmatprep.subr.bf16.mxu1 %v3659_v3 }
 0xa21   : > { %3662 = vmatpush3.bf16.msra.mxu1 %v3659_v3 }
 0xa22   : > { %3664 = vmatprep.subr.bf16.mxu1 %v3663_v40 }
 0xa25   : > { %3666 = vmatpush3.bf16.msra.mxu1 %v3663_v40 }
 0xa26   : > { %3668 = vmatprep.subr.bf16.mxu1 %v3667_v51 }
 0xa29   : > { %3670 = vmatpush3.bf16.msra.mxu1 %v3667_v51 }
 0xadc   : > { %v3433_v31 = vpop.f32.mrb[24].mxu0 }
 0xadd   : > { %v2495_v57 = vmul.f32 %v3433_v31, %v3044_v55  ;;  %v2448_v9 = vpop.f32.mrb[25].mxu0 }
 0xade   : > { %v2494_v53 = vmul.f32 %v3044_v55, %v2448_v9 }
 0xadf   : > { %v2510_v52 = vadd.f32 %v3045_v60, %v2495_v57 }
 0xae0   : > { %v2509_v62 = vadd.f32 %v3045_v60, %v2494_v53  ;;  %v3436_v46 = vpop.f32.mrb[26].mxu0 }
 0xae1   : > { %v2497_v15 = vmul.f32 %v3436_v46, %v3044_v55  ;;  %2527 = vrot.lane.b32.xlu1 %v2510_v52, %s4303_s25  ;;  %v2458_v41 = vpop.f32.mrb[27].mxu0 }
 0xae2   : > { %v2496_v26 = vmul.f32 %v3044_v55, %v2458_v41  ;;  %2525 = vrot.lane.b32.xlu0 %v2509_v62, %s4303_s25 }
 0xae3   : > { %v2512_v2 = vadd.f32 %v3045_v60, %v2497_v15 }
 0xae4   : > { %v2511_v10 = vadd.f32 %v3045_v60, %v2496_v26  ;;  %v3439_v14 = vpop.f32.mrb[28].mxu0 }
 0xae5   : > { %v2499_v7 = vmul.f32 %v3439_v14, %v3044_v55  ;;  %2531 = vrot.lane.b32.xlu1 %v2512_v2, %s4303_s25  ;;  %v2468_v43 = vpop.f32.mrb[29].mxu0 }
 0xae6   : > { %v2498_v17 = vmul.f32 %v3044_v55, %v2468_v43  ;;  %2529 = vrot.lane.b32.xlu0 %v2511_v10, %s4303_s25 }
 0xae7   : > { %v2514_v23 = vadd.f32 %v3045_v60, %v2499_v7 }
 0xae8   : > { %v2513_v24 = vadd.f32 %v3045_v60, %v2498_v17 }
 0xae9   : > { %2535 = vrot.lane.b32.xlu1 %v2514_v23, %s4303_s25 }
 0xaea   : > { %v3442_v56 = vpop.f32.mrb[30].mxu0  ;;  %2533 = vrot.lane.b32.xlu0 %v2513_v24, %s4303_s25 }
 0xaeb   : > { %v2501_v5 = vmul.f32 %v3442_v56, %v3044_v55  ;;  %v2478_v63 = vpop.f32.mrb[31].mxu0 }
 0xaec   : > { %v2500_v25 = vmul.f32 %v3044_v55, %v2478_v63 }
 0xaed   : > { %v2516_v12 = vadd.f32 %v3045_v60, %v2501_v5 }
 0xaee   : > { %v2515_v20 = vadd.f32 %v3045_v60, %v2500_v25 }
 0xaef   : > { %2539 = vrot.lane.b32.xlu1 %v2516_v12, %s4303_s25 }
 0xaf0   : > { %2537 = vrot.lane.b32.xlu0 %v2515_v20, %s4303_s25  ;;  %s4306_s25 = smov [#allocation18]  }
 0xaf1   : > { %s4212_s1 = sshll.u32 %s4306_s25, 4  ;;  %s4213_s1 = int_to_ptr.vmem [resolvable:$false] %s4212_s1 }
 0xaf2   : > { %p4215_p10 = scmp.lt.s32.totalorder %s5332_s0, %s4213_s1 }
 0xb53   : > { %v2528_v32 = vpop.permute.xlu1 %2527 }
 0xb54   : > { %v2550_v58 = vadd.f32 %v2528_v32, %v5130_v19  ;;  %v2526_v21 = vpop.permute.xlu0 %2525 }
 0xb55   : > { %v2549_v49 = vadd.f32 %v2526_v21, %v5133_v18 }
 0xb56   : > { %v2558_v8 = vsel %vm1018_vm0, %v4740_v34, %v2550_v58 }
 0xb57   : > { %v2532_v0 = vpop.permute.xlu1 %2531  ;;  %v2557_v28 = vsel %vm1018_vm0, %v4735_v30, %v2549_v49 }
 0xb58   : > { %v2552_v37 = vadd.f32 %v2532_v0, %v5140_v16  ;;  %3475 = vmatprep.mubr.f32.mxu1 %v2557_v28  ;;  %v2530_v29 = vpop.permute.xlu0 %2529 }
 0xb59   : > { %v2551_v27 = vadd.f32 %v2530_v29, %v5143_v4  ;;  %3476 = vmatmul.mubr.f32.vlgmr.msra.gmra.mrb[24].mxu1 %v2558_v8 }
 0xb5a   : > { %v2560_v30 = vsel %vm1018_vm0, %v4749_v38, %v2552_v37 }
 0xb5b   : > { %v2536_v1 = vpop.permute.xlu1 %2535  ;;  %v2559_v19 = vsel %vm1018_vm0, %v4742_v35, %v2551_v27 }
 0xb5c   : > { %v2554_v18 = vadd.f32 %v2536_v1, %v5150_v59  ;;  %3478 = vmatprep.mubr.f32.mxu1 %v2559_v19  ;;  %v2534_v47 = vpop.permute.xlu0 %2533 }
 0xb5d   : > { %v2553_v34 = vadd.f32 %v2534_v47, %v5153_v48  ;;  %3479 = vmatmul.mubr.f32.gmra.mrb[26].mxu1 %v2560_v30 }
 0xb5e   : > { %v2562_v4 = vsel %vm1018_vm0, %v4758_v42, %v2554_v18 }
 0xb5f   : > { %v2561_v16 = vsel %vm1018_vm0, %v4751_v39, %v2553_v34  ;;  %v3046_v39 = vld [vmem:[%s5475_s17] ss:$0 sm:$0xff]  ;;  %s4214_s17 = scalar_lea.vmem %s4213_s1, 2048 }
 0xb60   : > { %3481 = vmatprep.mubr.f32.mxu1 %v2561_v16  ;;  %p4216_p2 = scmp.lt.s32.totalorder %s4214_s17, %s4208_s4 }
 0xb61   : > { %v2540_v6 = vpop.permute.xlu1 %2539  ;;  %3482 = vmatmul.mubr.f32.gmra.mrb[28].mxu1 %v2562_v4 }
 0xb62   : > { %v2556_v35 = vadd.f32 %v2540_v6, %v5160_v22  ;;  %v2538_v59 = vpop.permute.xlu0 %2537  ;;  %v3047_v22 = vld [vmem:[%s5476_s2] ss:$0 sm:$0xff]  ;;  %p4217_p3 = por %p4216_p2, %p4215_p10 }
 0xb63   : > { %v2555_v33 = vadd.f32 %v2538_v59, %v5163_v11 }
 0xb64   : > { %v2564_v48 = vsel %vm1018_vm0, %v4766_v45, %v2556_v35  ;;  %p4218_p4 = pnand %p4217_p3, %p4211_p0 }
 0xb65   : > { %v2563_v38 = vsel %vm1018_vm0, %v4762_v44, %v2555_v33 }
 0xb66   : > { %3484 = vmatprep.mubr.f32.mxu1 %v2563_v38 }
 0xb67   : > { %3485 = vmatmul.mubr.f32.gmra.mrb[30].mxu1 %v2564_v48 }
 0xc2c   : > { %v3477_v42 = vpop.f32.mrb[24].mxu1 }
 0xc2d   : > { %v2694_v36 = vmul.f32 %v3477_v42, %v3046_v39  ;;  %v2647_v3 = vpop.f32.mrb[25].mxu1 }
 0xc2e   : > { %v2693_v11 = vmul.f32 %v3046_v39, %v2647_v3 }
 0xc2f   : > { %v2709_v61 = vadd.f32 %v3047_v22, %v2694_v36 }
 0xc30   : > { %v2708_v54 = vadd.f32 %v3047_v22, %v2693_v11  ;;  %v3480_v44 = vpop.f32.mrb[26].mxu1 }
 0xc31   : > { %v3049_v40 = vmul.f32 -1.442695, %v2709_v61  ;;  %v2696_v50 = vmul.f32 %v3480_v44, %v3046_v39  ;;  %v2657_v13 = vpop.f32.mrb[27].mxu1 }
 0xc32   : > { %v3048_v45 = vmul.f32 -1.442695, %v2708_v54  ;;  %v2695_v51 = vmul.f32 %v3046_v39, %v2657_v13 }
 0xc33   : > { %3924 = vpow2.f32 %v3049_v40  ;;  %v2711_v55 = vadd.f32 %v3047_v22, %v2696_v50 }
 0xc34   : > { %3926 = vpow2.f32 %v3048_v45  ;;  %v2710_v31 = vadd.f32 %v3047_v22, %v2695_v51  ;;  %v3483_v60 = vpop.f32.mrb[28].mxu1 }
 0xc35   : > { %v3051_v57 = vmul.f32 -1.442695, %v2711_v55  ;;  %v2698_v9 = vmul.f32 %v3483_v60, %v3046_v39  ;;  %v2667_v53 = vpop.f32.mrb[29].mxu1 }
 0xc36   : > { %v3050_v52 = vmul.f32 -1.442695, %v2710_v31  ;;  %v2697_v62 = vmul.f32 %v3046_v39, %v2667_v53 }
 0xc37   : > { %3928 = vpow2.f32 %v3051_v57  ;;  %v2713_v46 = vadd.f32 %v3047_v22, %v2698_v9 }
 0xc38   : > { %3930 = vpow2.f32 %v3050_v52  ;;  %v2712_v15 = vadd.f32 %v3047_v22, %v2697_v62 }
 0xc39   : > { %v3053_v41 = vmul.f32 -1.442695, %v2713_v46 }
 0xc3a   : > { %v3052_v26 = vmul.f32 -1.442695, %v2712_v15  ;;  %v3486_v2 = vpop.f32.mrb[30].mxu1 }
 0xc3b   : > { %3932 = vpow2.f32 %v3053_v41  ;;  %v2700_v10 = vmul.f32 %v3486_v2, %v3046_v39  ;;  %v2677_v14 = vpop.f32.mrb[31].mxu1 }
 0xc3c   : > { %3934 = vpow2.f32 %v3052_v26  ;;  %v2699_v7 = vmul.f32 %v3046_v39, %v2677_v14 }
 0xc3d   : > { %v3925_v43 = vpop.eup %3924  ;;  %v2715_v17 = vadd.f32 %v3047_v22, %v2700_v10 }
 0xc3e   : > { %v3927_v23 = vpop.eup %3926  ;;  %v2741_v24 = vadd.f32 1.0, %v3925_v43  ;;  %v2714_v56 = vadd.f32 %v3047_v22, %v2699_v7 }
 0xc3f   : > { %v2740_v5 = vadd.f32 1.0, %v3927_v23  ;;  %v3055_v63 = vmul.f32 -1.442695, %v2715_v17 }
 0xc40   : > { %3936 = vrcp.f32 %v2741_v24  ;;  %v3054_v25 = vmul.f32 -1.442695, %v2714_v56 }
 0xc41   : > { %v3929_v12 = vpop.eup %3928  ;;  %3938 = vrcp.f32 %v2740_v5 }
 0xc42   : > { %v3931_v20 = vpop.eup %3930  ;;  %v2743_v32 = vadd.f32 1.0, %v3929_v12  ;;  %3940 = vpow2.f32 %v3055_v63 }
 0xc43   : > { %v2742_v58 = vadd.f32 1.0, %v3931_v20  ;;  %3942 = vpow2.f32 %v3054_v25 }
 0xc44   : > { %3944 = vrcp.f32 %v2743_v32 }
 0xc45   : > { %v3933_v21 = vpop.eup %3932  ;;  %3946 = vrcp.f32 %v2742_v58 }
 0xc46   : > { %v3935_v49 = vpop.eup %3934  ;;  %v2745_v0 = vadd.f32 1.0, %v3933_v21 }
 0xc47   : > { %v2744_v28 = vadd.f32 1.0, %v3935_v49 }
 0xc48   : > { %3948 = vrcp.f32 %v2745_v0 }
 0xc49   : > { %3950 = vrcp.f32 %v2744_v28 }
 0xc4a   : > { %v3937_v8 = vpop.eup %3936 }
 0xc4b   : > { %v3939_v37 = vpop.eup %3938  ;;  %v2765_v29 = vmul.f32 %v3937_v8, %v2709_v61 }
 0xc4c   : > { %v3941_v27 = vpop.eup %3940  ;;  %v2764_v1 = vmul.f32 %v3939_v37, %v2708_v54 }
 0xc4d   : > { %v3943_v19 = vpop.eup %3942  ;;  %2773 = vst [vmem:[%s797_s5 + $0x8] sm:$0xff] %v2765_v29  ;;  %v2747_v18 = vadd.f32 1.0, %v3941_v27 }
 0xc4e   : > { %v3945_v47 = vpop.eup %3944  ;;  %2772 = vst [vmem:[%s797_s5] sm:$0xff] %v2764_v1  ;;  %v2746_v30 = vadd.f32 1.0, %v3943_v19 }
 0xc4f   : > { %v3947_v34 = vpop.eup %3946  ;;  %v2767_v16 = vmul.f32 %v3945_v47, %v2711_v55  ;;  %3952 = vrcp.f32 %v2747_v18 }
 0xc50   : > { %v2766_v4 = vmul.f32 %v3947_v34, %v2710_v31  ;;  %3954 = vrcp.f32 %v2746_v30 }
 0xc51   : > { %2775 = vst [vmem:[%s797_s5 + $0x18] sm:$0xff] %v2767_v16 }
 0xc52   : > { %v3949_v6 = vpop.eup %3948  ;;  %2774 = vst [vmem:[%s797_s5 + $0x10] sm:$0xff] %v2766_v4 }
 0xc53   : > { %v3951_v35 = vpop.eup %3950  ;;  %v2769_v59 = vmul.f32 %v3949_v6, %v2713_v46 }
 0xc54   : > { %v2768_v33 = vmul.f32 %v3951_v35, %v2712_v15 }
 0xc55   : > { %2777 = vst [vmem:[%s797_s5 + $0x28] sm:$0xff] %v2769_v59 }
 0xc56   : > { %2776 = vst [vmem:[%s797_s5 + $0x20] sm:$0xff] %v2768_v33 }
 0xc59   : > { %v3953_v38 = vpop.eup %3952 }
 0xc5a   : > { %v3955_v48 = vpop.eup %3954  ;;  %v2771_v39 = vmul.f32 %v3953_v38, %v2715_v17 }
 0xc5b   : > { %v2770_v42 = vmul.f32 %v3955_v48, %v2714_v56 }
 0xc5c   : > { %2779 = vst [vmem:[%s797_s5 + $0x38] sm:$0xff] %v2771_v39 }
 0xc5d   : > { %2778 = vst [vmem:[%s797_s5 + $0x30] sm:$0xff] %v2770_v42 }
 0xc5e   : > { %4221 = shalt.err (!%p4218_p4)
}
 0xc5f   : > { %s4222_s29 = scalar_lea.hbm %s5330_s9, 1024  ;;  %s4226_s3 = scalar_lea.hbm %s5479_s20, 2048 }
 0xc60   : > { %p4223_p12 = scmp.ne.s32.totalorder %s5330_s9, %s4222_s29  ;;  %p4227_p11 = scmp.lt.u32.totalorder %s5330_s9, %s5479_s20 }
 0xc61   : > { %p4228_p13 = scmp.lt.u32.totalorder %s4226_s3, %s4222_s29  ;;  %p4230_p6 = scmp.lt.u32.totalorder %s4222_s29, %s5330_s9 }
 0xc62   : > { %p4224_p7 = pnand %p4223_p12, %p5480_p9 }
 0xc63   : > { %p4229_p1 = por %p4228_p13, %p4227_p11 }
 0xc64   : > { %p4225_p8 = pneg %p4224_p7 }
 0xc65   : > { %p4231_p5 = por %p4230_p6, %p4229_p1 }
 0xc67   : > { %p4232_p0 = pnand %p4231_p5, %p4225_p8 }
 0xc69   : > { %4235 = shalt.err (!%p4232_p0)
}
 0xc6a   : > { %s4307_s5 = smov 128   ;;  %s4308_s26 = smov 8  }
 0xc6b   : > { %3707 = dma.vmem_to_hbm [thread:$0]  (%p5480_p9), %s5332_s0, 1024, %s5330_s9, %s5336_s11, %s4307_s5, %s4307_s5, %s4308_s26  }
 0xc6c PF: > { %s5481_s30 = sld [smem:[#allocation28_spill]]  ;;  %s5482_s6 = sld [smem:[#allocation25_spill]] }
 0xc6d   : > { %s5483_s4 = sld [smem:[#allocation32_spill]] }
 0xc72   : > { %p3759_p10 = scmp.ge.s32.totalorder %s5481_s30, 2  ;;  %s2809_s25 = sand.u32 1, %s5482_s6  }
 0xc73   : > { %p5484_p2 = scmp.ne.s32.totalorder %s5483_s4, 0  ;;  %s2810_s1 = scalar_lea.sflag [#allocation5], %s2809_s25 }
 0xc75   : > { %p3738_p3 = pnand %p3759_p10, %p5484_p2 }
 0xc77   : > { %4273 = dma.done.wait (!%p3738_p3), %s2810_s1, 1024  }
 0xc78   : > { %4275 = vsyncadd (!%p3738_p3), %s2810_s1, 4294966272  ;;  %s5485_s30 = sld [smem:[#allocation29_spill]]  ;;  %s5486_s3 = sld [smem:[#allocation26_spill]] }
 0xc79   : > { %s5487_s28 = sld [smem:[#allocation27_spill]]  ;;  %s5488_s29 = sld [smem:[#allocation30_spill]] }
 0xc7e   : > { %p37_p4 = scmp.ge.s32.totalorder %s5485_s30, 4  }
 0xc80   :  { %39 = sbr.rel (!%p37_p4) target bundleno = 23 (0x17), region = 182 }
 0xc87   :  { %2815 = vsyncpa [#allocation4], 1 }
 0xc88   :  { %2817 = vsyncpa [#allocation4 + $0x1], 1 }
 0xc89   :  { %2818 = vsyncpa [#allocation7], 1 }
 0xc8a   :  { %2819 = vsyncpa [#allocation10], 1 }
 0xc8b   :  { %2820 = vsyncpa [#allocation13], 1 }
 0xc8c   :  { %2821 = vsyncpa [#allocation16], 1 }
 0xc8d   :  { %2822 = vsyncpa [#allocation5], 1 }
 0xc8e   :  { %2824 = vsyncpa [#allocation5 + $0x1], 1 }

</bundles_post_ra>
